<compile_context>
chip_gen: v5e
topology: v5e:2x2
jax: 0.10.0
libtpu: 0.0.40
codegen_flags: <defaults>
</compile_context>

<pallas_src>
from functools import partial

import jax
import jax.numpy as jnp
from jax.experimental import pallas as pl
from jax.experimental.pallas import tpu as pltpu


# ------------------------------ fused seq2seq kernel ------------------------------
def seq2seq_kernel(src_ids_ref, enc_tab_ref, dec_ids_ref, dec_tab_ref,
                   enc_whh_ref, dec_whh_ref, dec_wfc_ref, dec_bfc_ref,
                   out_ref,
                   enc_xp, dec_xp, dec_hs,
                   *, B, T_src, T_tgt, H):
    # Grid axis tiles the vocab dimension of the output projection.  The serial
    # recurrence runs once (grid step 0) and leaves the decoder hidden states in
    # the dec_hs VMEM scratch, which persists across grid iterations.
    @pl.when(pl.program_id(0) == 0)
    def _recurrence():
        # ---- in-kernel embedding gather fused with the input projections ----
        # The tables already hold  emb @ Wih^T + (b_ih + b_hh), so one one-hot
        # MXU matmul per stream does gather + projection + bias (hoisted out of
        # the recurrent loop).
        vl_src = enc_tab_ref.shape[0]
        src_oh = (src_ids_ref[...] ==
                  jax.lax.broadcasted_iota(jnp.int32, (T_src * B, vl_src), 1)
                  ).astype(jnp.float32)
        enc_xp[...] = jnp.dot(src_oh, enc_tab_ref[...],
                              preferred_element_type=jnp.float32)

        vl_tgt = dec_tab_ref.shape[0]
        dec_oh = (dec_ids_ref[...] ==
                  jax.lax.broadcasted_iota(jnp.int32, ((T_tgt - 1) * B, vl_tgt), 1)
                  ).astype(jnp.float32)
        dec_xp[...] = jnp.dot(dec_oh, dec_tab_ref[...],
                              preferred_element_type=jnp.float32)

        enc_whh = enc_whh_ref[...]   # (H, 4H) bf16, resident in vregs across the loop
        dec_whh = dec_whh_ref[...]

        def gate_step(xg, h, c, whh_T):
            # bf16 MXU operands on the serial h->h chain, f32 accumulation;
            # elementwise gate math kept f32 (v5e has no bf16 VPU/EUP).
            gates = xg + jnp.dot(h.astype(jnp.bfloat16), whh_T,
                                 preferred_element_type=jnp.float32)
            # Full-width activations over the whole (B, 4H=128) vreg: 2 EUP
            # pushes per step, slices taken from the pre-activated results.
            sig = jax.nn.sigmoid(gates)
            tnh = jnp.tanh(gates)
            i = sig[:, 0 * H:1 * H]            # PyTorch gate order [i, f, g, o]
            f = sig[:, 1 * H:2 * H]
            g = tnh[:, 2 * H:3 * H]
            o = sig[:, 3 * H:4 * H]
            c_new = f * c + i * g
            h_new = o * jnp.tanh(c_new)
            return h_new, c_new

        # ----------------------------- encoder recurrence -----------------------------
        def enc_body(t, carry):
            h, c = carry
            row = pl.multiple_of(t * B, B)
            return gate_step(enc_xp[pl.ds(row, B), :], h, c, enc_whh)

        h0 = jnp.zeros((B, H), jnp.float32)
        c0 = jnp.zeros((B, H), jnp.float32)
        h, c = jax.lax.fori_loop(0, T_src, enc_body, (h0, c0), unroll=True)

        # ----------------------------- decoder recurrence -----------------------------
        # outputs[0] = 0 by decoder convention; zero its hidden-state slot so the
        # batched projection below never reads uninitialized VMEM.
        dec_hs[pl.ds(0, B), :] = jnp.zeros((B, H), jnp.float32)

        def dec_body(t, carry):
            h_t, c_t = carry
            row_in = pl.multiple_of((t - 1) * B, B)      # teacher-forced target[t-1]
            h_new, c_new = gate_step(dec_xp[pl.ds(row_in, B), :], h_t, c_t, dec_whh)
            row_out = pl.multiple_of(t * B, B)
            dec_hs[pl.ds(row_out, B), :] = h_new
            return h_new, c_new

        jax.lax.fori_loop(1, T_tgt, dec_body, (h, c), unroll=True)

    # -------------- batched, V-tiled output projection (lane-dense stores) --------------
    logits = (jnp.dot(dec_hs[...].astype(jnp.bfloat16), dec_wfc_ref[...],
                      preferred_element_type=jnp.float32)
              + dec_bfc_ref[...])
    out_ref[...] = logits
    # Decoder convention: outputs[0] = 0 (never produced by the LSTM).
    out_ref[pl.ds(0, B), :] = jnp.zeros((B, out_ref.shape[1]), jnp.float32)


def _seq2seq_pallas(src_ids, enc_tab, dec_ids, dec_tab,
                    enc_whh_T, dec_whh_T, dec_wfc_T, dec_bfc,
                    *, B, T_src, T_tgt, H, V_pad, TV):
    NV = V_pad // TV

    def full_spec(arr):
        nd = arr.ndim
        return pl.BlockSpec(arr.shape, lambda j: (0,) * nd)

    kernel = partial(seq2seq_kernel, B=B, T_src=T_src, T_tgt=T_tgt, H=H)
    return pl.pallas_call(
        kernel,
        out_shape=jax.ShapeDtypeStruct((T_tgt * B, V_pad), jnp.float32),
        grid_spec=pltpu.PrefetchScalarGridSpec(
            num_scalar_prefetch=0,
            grid=(NV,),
            in_specs=[
                full_spec(src_ids),
                full_spec(enc_tab),
                full_spec(dec_ids),
                full_spec(dec_tab),
                full_spec(enc_whh_T),
                full_spec(dec_whh_T),
                pl.BlockSpec((H, TV), lambda j: (0, j)),      # dec_wfc^T, V-tiled
                pl.BlockSpec((1, TV), lambda j: (0, j)),      # dec_bfc, V-tiled
            ],
            out_specs=pl.BlockSpec((T_tgt * B, TV), lambda j: (0, j)),
            scratch_shapes=[
                pltpu.VMEM((T_src * B, 4 * H), jnp.float32),        # encoder x-projection
                pltpu.VMEM(((T_tgt - 1) * B, 4 * H), jnp.float32),  # decoder x-projection (trimmed)
                pltpu.VMEM((T_tgt * B, H), jnp.float32),            # decoder hidden states
            ],
        ),
        # V-tiles depend on the grid-step-0 recurrence through dec_hs scratch,
        # so the axis must stay sequential ("arbitrary").
        compiler_params=pltpu.CompilerParams(dimension_semantics=("arbitrary",)),
    )(src_ids, enc_tab, dec_ids, dec_tab, enc_whh_T, dec_whh_T, dec_wfc_T, dec_bfc)


# --------------------------- EncoderDecoder forward ---------------------------
def _round_up(x, m):
    return (x + m - 1) // m * m


def encoder_decoder_forward(params, source, target, teacher_forcing_ratio=0.5):
    """source: (T_src, B) int32 tokens; target: (T_tgt, B) int32 tokens."""
    T_src, B = source.shape
    T_tgt = target.shape[0]
    H = params["enc_whh"].shape[1]
    V = params["dec_wfc"].shape[0]

    B_pad = _round_up(max(B, 8), 8)          # sublane width
    V_pad = _round_up(max(V, 128), 128)      # lane width (output vocab)
    TV = min(V_pad, 512)                     # V tile for the projection grid

    # Fused gather tables: one row per vocab entry, already projected through
    # Wih^T and biased; padded to a lane-dense one-hot width.
    def gate_table(emb, wih, b, row_pad):
        tab = emb @ wih.T + b                # (V_in, 4H) f32
        return jnp.pad(tab, ((0, row_pad - tab.shape[0]), (0, 0)))

    vl_src = _round_up(max(params["enc_emb"].shape[0], 128), 128)
    vl_tgt = _round_up(max(params["dec_emb"].shape[0], 128), 128)
    enc_tab = gate_table(params["enc_emb"], params["enc_wih"], params["enc_b"], vl_src)
    dec_tab = gate_table(params["dec_emb"], params["dec_wih"], params["dec_b"], vl_tgt)

    # Token ids: pad batch to the sublane width (pad token 0 — those rows are
    # discarded at the end), flatten time x batch into rows.
    src_ids = jnp.pad(source, ((0, 0), (0, B_pad - B))).reshape(T_src * B_pad, 1).astype(jnp.int32)
    # Decoder consumes target[t-1] for t = 1..T_tgt-1 only.
    dec_ids = (jnp.pad(target[:T_tgt - 1], ((0, 0), (0, B_pad - B)))
               .reshape((T_tgt - 1) * B_pad, 1).astype(jnp.int32))

    # Pre-transposed (and pre-cast) recurrent / projection weights.
    enc_whh_T = params["enc_whh"].T.astype(jnp.bfloat16)                          # (H, 4H)
    dec_whh_T = params["dec_whh"].T.astype(jnp.bfloat16)                          # (H, 4H)
    dec_wfc_T = jnp.pad(params["dec_wfc"].T, ((0, 0), (0, V_pad - V))).astype(jnp.bfloat16)  # (H, V_pad)
    dec_bfc = jnp.pad(params["dec_bfc"], ((0, 0), (0, V_pad - V)))                # (1, V_pad) f32

    out = _seq2seq_pallas(src_ids, enc_tab, dec_ids, dec_tab,
                          enc_whh_T, dec_whh_T, dec_wfc_T, dec_bfc,
                          B=B_pad, T_src=T_src, T_tgt=T_tgt, H=H,
                          V_pad=V_pad, TV=TV)
    out = out.reshape(T_tgt, B_pad, V_pad)[:, :B, :V]
    return out  # (T_tgt, B, V_tgt)


# ------------------------------ pure-JAX reference ----------------------------
def _reference_forward(params, source, target):
    src_emb = jnp.take(params["enc_emb"], source, axis=0)
    tgt_emb = jnp.take(params["dec_emb"], target, axis=0)
    H = params["enc_whh"].shape[-1]
    B = source.shape[1]

    def cell_step(carry, x, wih, whh, b):
        h, c = carry
        gates = x @ wih.T + h @ whh.T + b[0]
        i = jax.nn.sigmoid(gates[:, 0:H])
        f = jax.nn.sigmoid(gates[:, H:2 * H])
        g = jnp.tanh(gates[:, 2 * H:3 * H])
        o = jax.nn.sigmoid(gates[:, 3 * H:4 * H])
        c = f * c + i * g
        h = o * jnp.tanh(c)
        return (h, c)

    h = jnp.zeros((B, H), jnp.float32)
    c = jnp.zeros((B, H), jnp.float32)
    for t in range(source.shape[0]):
        h, c = cell_step((h, c), src_emb[t], params["enc_wih"],
                         params["enc_whh"], params["enc_b"])

    V = params["dec_wfc"].shape[0]
    outs = [jnp.zeros((B, V), jnp.float32)]
    for t in range(1, target.shape[0]):
        h, c = cell_step((h, c), tgt_emb[t - 1], params["dec_wih"],
                         params["dec_whh"], params["dec_b"])
        outs.append(h @ params["dec_wfc"].T + params["dec_bfc"][0])
    return jnp.stack(outs, axis=0)


# ----------------------------------- main -------------------------------------
if __name__ == "__main__":
    SRC_VOCAB, TGT_VOCAB = 16, 16
    EMB, HID = 32, 32
    T_SRC, T_TGT, BATCH = 8, 8, 2

    key = jax.random.PRNGKey(0)
    ks = jax.random.split(key, 12)
    kscale = 1.0 / jnp.sqrt(HID)

    def u(k, shape):
        return jax.random.uniform(k, shape, jnp.float32, -kscale, kscale)

    params = {
        "enc_emb": u(ks[0], (SRC_VOCAB, EMB)),
        "enc_wih": u(ks[1], (4 * HID, EMB)),
        "enc_whh": u(ks[2], (4 * HID, HID)),
        "enc_b":   u(ks[3], (1, 4 * HID)),   # b_ih + b_hh folded together
        "dec_emb": u(ks[4], (TGT_VOCAB, EMB)),
        "dec_wih": u(ks[5], (4 * HID, EMB)),
        "dec_whh": u(ks[6], (4 * HID, HID)),
        "dec_b":   u(ks[7], (1, 4 * HID)),
        "dec_wfc": u(ks[8], (TGT_VOCAB, HID)),
        "dec_bfc": u(ks[9], (1, TGT_VOCAB)),
    }

    source = jax.random.randint(ks[10], (T_SRC, BATCH), 0, SRC_VOCAB, jnp.int32)
    target = jax.random.randint(ks[11], (T_TGT, BATCH), 0, TGT_VOCAB, jnp.int32)

    outputs = encoder_decoder_forward(params, source, target,
                                      teacher_forcing_ratio=0.5)
    outputs = jax.block_until_ready(outputs)

    ref = _reference_forward(params, source, target)
    assert outputs.shape == (T_TGT, BATCH, TGT_VOCAB)
    # Tolerance loosened vs. the f32 reference because the recurrent and output
    # matmuls feed bf16 operands to the MXU (f32 accumulation) per the review.
    assert jnp.allclose(outputs, ref, atol=3e-2, rtol=3e-2), (
        float(jnp.max(jnp.abs(outputs - ref))))

    print("KERNEL_OK")
</pallas_src>

<mosaic_0001>
module attributes {stable_mosaic.version = 11 : i64} {
  func.func @seq2seq_kernel(%arg0: i32, %arg1: memref<64x1xi32, #tpu.memory_space<vmem>>, %arg2: memref<128x128xf32, #tpu.memory_space<vmem>>, %arg3: memref<56x1xi32, #tpu.memory_space<vmem>>, %arg4: memref<128x128xf32, #tpu.memory_space<vmem>>, %arg5: memref<32x128xbf16, #tpu.memory_space<vmem>>, %arg6: memref<32x128xbf16, #tpu.memory_space<vmem>>, %arg7: memref<32x128xbf16, #tpu.memory_space<vmem>>, %arg8: memref<1x128xf32, #tpu.memory_space<vmem>>, %arg9: memref<64x128xf32, #tpu.memory_space<vmem>>, %arg10: memref<64x128xf32, #tpu.memory_space<vmem>>, %arg11: memref<56x128xf32, #tpu.memory_space<vmem>>, %arg12: memref<64x32xf32, #tpu.memory_space<vmem>>) attributes {dimension_semantics = [#tpu.dimension_semantics<arbitrary>], iteration_bounds = array<i64: 1>, scalar_prefetch = 0 : i64, scratch_operands = 3 : i64, tpu.core_type = #tpu.core_type<tc>, window_params = [{pipeline_mode = #tpu.pipeline_mode<synchronous>, transform_indices = @transform_0, window_bounds = array<i64: 64, 1>}, {pipeline_mode = #tpu.pipeline_mode<synchronous>, transform_indices = @transform_1, window_bounds = array<i64: 128, 128>}, {pipeline_mode = #tpu.pipeline_mode<synchronous>, transform_indices = @transform_2, window_bounds = array<i64: 56, 1>}, {pipeline_mode = #tpu.pipeline_mode<synchronous>, transform_indices = @transform_3, window_bounds = array<i64: 128, 128>}, {pipeline_mode = #tpu.pipeline_mode<synchronous>, transform_indices = @transform_4, window_bounds = array<i64: 32, 128>}, {pipeline_mode = #tpu.pipeline_mode<synchronous>, transform_indices = @transform_5, window_bounds = array<i64: 32, 128>}, {transform_indices = @transform_6, window_bounds = array<i64: 32, 128>}, {transform_indices = @transform_7, window_bounds = array<i64: 1, 128>}, {transform_indices = @transform_8, window_bounds = array<i64: 64, 128>}]} {
    %c0_i32 = arith.constant 0 : i32
    %0 = arith.cmpi eq, %arg0, %c0_i32 : i32
    %1 = arith.extui %0 : i1 to i32
    %c0_i32_0 = arith.constant 0 : i32
    %2 = arith.cmpi ne, %1, %c0_i32_0 : i32
    scf.if %2 {
      %c0_11 = arith.constant 0 : index
      %c0_12 = arith.constant 0 : index
      %13 = vector.load %arg1[%c0_11, %c0_12] : memref<64x1xi32, #tpu.memory_space<vmem>>, vector<64x1xi32>
      %14 = tpu.iota {dimensions = array<i32: 1>} : vector<64x128xi32>
      %15 = vector.broadcast %13 : vector<64x1xi32> to vector<64x128xi32>
      %16 = arith.cmpi eq, %15, %14 : vector<64x128xi32>
      %17 = arith.extui %16 : vector<64x128xi1> to vector<64x128xi32>
      %18 = arith.sitofp %17 : vector<64x128xi32> to vector<64x128xf32>
      %c0_13 = arith.constant 0 : index
      %c0_14 = arith.constant 0 : index
      %19 = vector.load %arg2[%c0_13, %c0_14] : memref<128x128xf32, #tpu.memory_space<vmem>>, vector<128x128xf32>
      %cst_15 = arith.constant dense<0.000000e+00> : vector<64x128xf32>
      %20 = tpu.matmul %18, %19, %cst_15 {dimension_numbers = #tpu.dot_dimension_numbers<[1], [0], [0], [1], [0, 0, 1, 1], [], []>} : vector<64x128xf32>, vector<128x128xf32>, vector<64x128xf32> -> vector<64x128xf32>
      %c0_16 = arith.constant 0 : index
      %c0_17 = arith.constant 0 : index
      %21 = vector.load %arg10[%c0_16, %c0_17] : memref<64x128xf32, #tpu.memory_space<vmem>>, vector<64x128xf32>
      tpu.vector_store %arg10[%c0_16, %c0_17], %20 {strides = array<i32>} : memref<64x128xf32, #tpu.memory_space<vmem>>, vector<64x128xf32>,
      %c0_18 = arith.constant 0 : index
      %c0_19 = arith.constant 0 : index
      %22 = vector.load %arg3[%c0_18, %c0_19] : memref<56x1xi32, #tpu.memory_space<vmem>>, vector<56x1xi32>
      %23 = tpu.iota {dimensions = array<i32: 1>} : vector<56x128xi32>
      %24 = vector.broadcast %22 : vector<56x1xi32> to vector<56x128xi32>
      %25 = arith.cmpi eq, %24, %23 : vector<56x128xi32>
      %26 = arith.extui %25 : vector<56x128xi1> to vector<56x128xi32>
      %27 = arith.sitofp %26 : vector<56x128xi32> to vector<56x128xf32>
      %c0_20 = arith.constant 0 : index
      %c0_21 = arith.constant 0 : index
      %28 = vector.load %arg4[%c0_20, %c0_21] : memref<128x128xf32, #tpu.memory_space<vmem>>, vector<128x128xf32>
      %cst_22 = arith.constant dense<0.000000e+00> : vector<56x128xf32>
      %29 = tpu.matmul %27, %28, %cst_22 {dimension_numbers = #tpu.dot_dimension_numbers<[1], [0], [0], [1], [0, 0, 1, 1], [], []>} : vector<56x128xf32>, vector<128x128xf32>, vector<56x128xf32> -> vector<56x128xf32>
      %c0_23 = arith.constant 0 : index
      %c0_24 = arith.constant 0 : index
      %30 = vector.load %arg11[%c0_23, %c0_24] : memref<56x128xf32, #tpu.memory_space<vmem>>, vector<56x128xf32>
      tpu.vector_store %arg11[%c0_23, %c0_24], %29 {strides = array<i32>} : memref<56x128xf32, #tpu.memory_space<vmem>>, vector<56x128xf32>,
      %c0_25 = arith.constant 0 : index
      %c0_26 = arith.constant 0 : index
      %31 = vector.load %arg5[%c0_25, %c0_26] : memref<32x128xbf16, #tpu.memory_space<vmem>>, vector<32x128xbf16>
      %c0_27 = arith.constant 0 : index
      %c0_28 = arith.constant 0 : index
      %32 = vector.load %arg6[%c0_27, %c0_28] : memref<32x128xbf16, #tpu.memory_space<vmem>>, vector<32x128xbf16>
      %cst_29 = arith.constant 0.000000e+00 : f32
      %33 = vector.broadcast %cst_29 : f32 to vector<8x32xf32>
      %cst_30 = arith.constant 0.000000e+00 : f32
      %34 = vector.broadcast %cst_30 : f32 to vector<8x32xf32>
      %c0_i32_31 = arith.constant 0 : i32
      %c8_i32 = arith.constant 8 : i32
      %35 = arith.muli %c0_i32_31, %c8_i32 : i32
      %36 = tpu.assume_multiple %35, 8 : i32
      %37 = arith.index_cast %36 : i32 to index
      %c0_32 = arith.constant 0 : index
      %38 = vector.load %arg10[%37, %c0_32] : memref<64x128xf32, #tpu.memory_space<vmem>>, vector<8x128xf32>
      %39 = arith.truncf %33 : vector<8x32xf32> to vector<8x32xbf16>
      %cst_33 = arith.constant dense<0.000000e+00> : vector<8x128xf32>
      %40 = tpu.matmul %39, %31, %cst_33 {dimension_numbers = #tpu.dot_dimension_numbers<[1], [0], [0], [1], [0, 0, 1, 1], [], []>} : vector<8x32xbf16>, vector<32x128xbf16>, vector<8x128xf32> -> vector<8x128xf32>
      %41 = arith.addf %38, %40 : vector<8x128xf32>
      %42 = arith.negf %41 : vector<8x128xf32>
      %43 = math.exp %42 : vector<8x128xf32>
      %cst_34 = arith.constant 1.000000e+00 : f32
      %44 = vector.broadcast %cst_34 : f32 to vector<8x128xf32>
      %45 = arith.addf %44, %43 : vector<8x128xf32>
      %46 = arith.divf %44, %45 : vector<8x128xf32>
      %47 = math.tanh %41 : vector<8x128xf32>
      %48 = vector.extract_strided_slice %46 {offsets = [0, 0], sizes = [8, 32], strides = [1, 1]} : vector<8x128xf32> to vector<8x32xf32>
      %49 = vector.extract_strided_slice %46 {offsets = [0, 32], sizes = [8, 32], strides = [1, 1]} : vector<8x128xf32> to vector<8x32xf32>
      %50 = vector.extract_strided_slice %47 {offsets = [0, 64], sizes = [8, 32], strides = [1, 1]} : vector<8x128xf32> to vector<8x32xf32>
      %51 = vector.extract_strided_slice %46 {offsets = [0, 96], sizes = [8, 32], strides = [1, 1]} : vector<8x128xf32> to vector<8x32xf32>
      %52 = arith.mulf %49, %34 : vector<8x32xf32>
      %53 = arith.mulf %48, %50 : vector<8x32xf32>
      %54 = arith.addf %52, %53 : vector<8x32xf32>
      %55 = math.tanh %54 : vector<8x32xf32>
      %56 = arith.mulf %51, %55 : vector<8x32xf32>
      %c1_i32 = arith.constant 1 : i32
      %c8_i32_35 = arith.constant 8 : i32
      %57 = arith.muli %c1_i32, %c8_i32_35 : i32
      %58 = tpu.assume_multiple %57, 8 : i32
      %59 = arith.index_cast %58 : i32 to index
      %c0_36 = arith.constant 0 : index
      %60 = vector.load %arg10[%59, %c0_36] : memref<64x128xf32, #tpu.memory_space<vmem>>, vector<8x128xf32>
      %61 = arith.truncf %56 : vector<8x32xf32> to vector<8x32xbf16>
      %cst_37 = arith.constant dense<0.000000e+00> : vector<8x128xf32>
      %62 = tpu.matmul %61, %31, %cst_37 {dimension_numbers = #tpu.dot_dimension_numbers<[1], [0], [0], [1], [0, 0, 1, 1], [], []>} : vector<8x32xbf16>, vector<32x128xbf16>, vector<8x128xf32> -> vector<8x128xf32>
      %63 = arith.addf %60, %62 : vector<8x128xf32>
      %64 = arith.negf %63 : vector<8x128xf32>
      %65 = math.exp %64 : vector<8x128xf32>
      %cst_38 = arith.constant 1.000000e+00 : f32
      %66 = vector.broadcast %cst_38 : f32 to vector<8x128xf32>
      %67 = arith.addf %66, %65 : vector<8x128xf32>
      %68 = arith.divf %66, %67 : vector<8x128xf32>
      %69 = math.tanh %63 : vector<8x128xf32>
      %70 = vector.extract_strided_slice %68 {offsets = [0, 0], sizes = [8, 32], strides = [1, 1]} : vector<8x128xf32> to vector<8x32xf32>
      %71 = vector.extract_strided_slice %68 {offsets = [0, 32], sizes = [8, 32], strides = [1, 1]} : vector<8x128xf32> to vector<8x32xf32>
      %72 = vector.extract_strided_slice %69 {offsets = [0, 64], sizes = [8, 32], strides = [1, 1]} : vector<8x128xf32> to vector<8x32xf32>
      %73 = vector.extract_strided_slice %68 {offsets = [0, 96], sizes = [8, 32], strides = [1, 1]} : vector<8x128xf32> to vector<8x32xf32>
      %74 = arith.mulf %71, %54 : vector<8x32xf32>
      %75 = arith.mulf %70, %72 : vector<8x32xf32>
      %76 = arith.addf %74, %75 : vector<8x32xf32>
      %77 = math.tanh %76 : vector<8x32xf32>
      %78 = arith.mulf %73, %77 : vector<8x32xf32>
      %c2_i32 = arith.constant 2 : i32
      %c8_i32_39 = arith.constant 8 : i32
      %79 = arith.muli %c2_i32, %c8_i32_39 : i32
      %80 = tpu.assume_multiple %79, 8 : i32
      %81 = arith.index_cast %80 : i32 to index
      %c0_40 = arith.constant 0 : index
      %82 = vector.load %arg10[%81, %c0_40] : memref<64x128xf32, #tpu.memory_space<vmem>>, vector<8x128xf32>
      %83 = arith.truncf %78 : vector<8x32xf32> to vector<8x32xbf16>
      %cst_41 = arith.constant dense<0.000000e+00> : vector<8x128xf32>
      %84 = tpu.matmul %83, %31, %cst_41 {dimension_numbers = #tpu.dot_dimension_numbers<[1], [0], [0], [1], [0, 0, 1, 1], [], []>} : vector<8x32xbf16>, vector<32x128xbf16>, vector<8x128xf32> -> vector<8x128xf32>
      %85 = arith.addf %82, %84 : vector<8x128xf32>
      %86 = arith.negf %85 : vector<8x128xf32>
      %87 = math.exp %86 : vector<8x128xf32>
      %cst_42 = arith.constant 1.000000e+00 : f32
      %88 = vector.broadcast %cst_42 : f32 to vector<8x128xf32>
      %89 = arith.addf %88, %87 : vector<8x128xf32>
      %90 = arith.divf %88, %89 : vector<8x128xf32>
      %91 = math.tanh %85 : vector<8x128xf32>
      %92 = vector.extract_strided_slice %90 {offsets = [0, 0], sizes = [8, 32], strides = [1, 1]} : vector<8x128xf32> to vector<8x32xf32>
      %93 = vector.extract_strided_slice %90 {offsets = [0, 32], sizes = [8, 32], strides = [1, 1]} : vector<8x128xf32> to vector<8x32xf32>
      %94 = vector.extract_strided_slice %91 {offsets = [0, 64], sizes = [8, 32], strides = [1, 1]} : vector<8x128xf32> to vector<8x32xf32>
      %95 = vector.extract_strided_slice %90 {offsets = [0, 96], sizes = [8, 32], strides = [1, 1]} : vector<8x128xf32> to vector<8x32xf32>
      %96 = arith.mulf %93, %76 : vector<8x32xf32>
      %97 = arith.mulf %92, %94 : vector<8x32xf32>
      %98 = arith.addf %96, %97 : vector<8x32xf32>
      %99 = math.tanh %98 : vector<8x32xf32>
      %100 = arith.mulf %95, %99 : vector<8x32xf32>
      %c3_i32 = arith.constant 3 : i32
      %c8_i32_43 = arith.constant 8 : i32
      %101 = arith.muli %c3_i32, %c8_i32_43 : i32
      %102 = tpu.assume_multiple %101, 8 : i32
      %103 = arith.index_cast %102 : i32 to index
      %c0_44 = arith.constant 0 : index
      %104 = vector.load %arg10[%103, %c0_44] : memref<64x128xf32, #tpu.memory_space<vmem>>, vector<8x128xf32>
      %105 = arith.truncf %100 : vector<8x32xf32> to vector<8x32xbf16>
      %cst_45 = arith.constant dense<0.000000e+00> : vector<8x128xf32>
      %106 = tpu.matmul %105, %31, %cst_45 {dimension_numbers = #tpu.dot_dimension_numbers<[1], [0], [0], [1], [0, 0, 1, 1], [], []>} : vector<8x32xbf16>, vector<32x128xbf16>, vector<8x128xf32> -> vector<8x128xf32>
      %107 = arith.addf %104, %106 : vector<8x128xf32>
      %108 = arith.negf %107 : vector<8x128xf32>
      %109 = math.exp %108 : vector<8x128xf32>
      %cst_46 = arith.constant 1.000000e+00 : f32
      %110 = vector.broadcast %cst_46 : f32 to vector<8x128xf32>
      %111 = arith.addf %110, %109 : vector<8x128xf32>
      %112 = arith.divf %110, %111 : vector<8x128xf32>
      %113 = math.tanh %107 : vector<8x128xf32>
      %114 = vector.extract_strided_slice %112 {offsets = [0, 0], sizes = [8, 32], strides = [1, 1]} : vector<8x128xf32> to vector<8x32xf32>
      %115 = vector.extract_strided_slice %112 {offsets = [0, 32], sizes = [8, 32], strides = [1, 1]} : vector<8x128xf32> to vector<8x32xf32>
      %116 = vector.extract_strided_slice %113 {offsets = [0, 64], sizes = [8, 32], strides = [1, 1]} : vector<8x128xf32> to vector<8x32xf32>
      %117 = vector.extract_strided_slice %112 {offsets = [0, 96], sizes = [8, 32], strides = [1, 1]} : vector<8x128xf32> to vector<8x32xf32>
      %118 = arith.mulf %115, %98 : vector<8x32xf32>
      %119 = arith.mulf %114, %116 : vector<8x32xf32>
      %120 = arith.addf %118, %119 : vector<8x32xf32>
      %121 = math.tanh %120 : vector<8x32xf32>
      %122 = arith.mulf %117, %121 : vector<8x32xf32>
      %c4_i32 = arith.constant 4 : i32
      %c8_i32_47 = arith.constant 8 : i32
      %123 = arith.muli %c4_i32, %c8_i32_47 : i32
      %124 = tpu.assume_multiple %123, 8 : i32
      %125 = arith.index_cast %124 : i32 to index
      %c0_48 = arith.constant 0 : index
      %126 = vector.load %arg10[%125, %c0_48] : memref<64x128xf32, #tpu.memory_space<vmem>>, vector<8x128xf32>
      %127 = arith.truncf %122 : vector<8x32xf32> to vector<8x32xbf16>
      %cst_49 = arith.constant dense<0.000000e+00> : vector<8x128xf32>
      %128 = tpu.matmul %127, %31, %cst_49 {dimension_numbers = #tpu.dot_dimension_numbers<[1], [0], [0], [1], [0, 0, 1, 1], [], []>} : vector<8x32xbf16>, vector<32x128xbf16>, vector<8x128xf32> -> vector<8x128xf32>
      %129 = arith.addf %126, %128 : vector<8x128xf32>
      %130 = arith.negf %129 : vector<8x128xf32>
      %131 = math.exp %130 : vector<8x128xf32>
      %cst_50 = arith.constant 1.000000e+00 : f32
      %132 = vector.broadcast %cst_50 : f32 to vector<8x128xf32>
      %133 = arith.addf %132, %131 : vector<8x128xf32>
      %134 = arith.divf %132, %133 : vector<8x128xf32>
      %135 = math.tanh %129 : vector<8x128xf32>
      %136 = vector.extract_strided_slice %134 {offsets = [0, 0], sizes = [8, 32], strides = [1, 1]} : vector<8x128xf32> to vector<8x32xf32>
      %137 = vector.extract_strided_slice %134 {offsets = [0, 32], sizes = [8, 32], strides = [1, 1]} : vector<8x128xf32> to vector<8x32xf32>
      %138 = vector.extract_strided_slice %135 {offsets = [0, 64], sizes = [8, 32], strides = [1, 1]} : vector<8x128xf32> to vector<8x32xf32>
      %139 = vector.extract_strided_slice %134 {offsets = [0, 96], sizes = [8, 32], strides = [1, 1]} : vector<8x128xf32> to vector<8x32xf32>
      %140 = arith.mulf %137, %120 : vector<8x32xf32>
      %141 = arith.mulf %136, %138 : vector<8x32xf32>
      %142 = arith.addf %140, %141 : vector<8x32xf32>
      %143 = math.tanh %142 : vector<8x32xf32>
      %144 = arith.mulf %139, %143 : vector<8x32xf32>
      %c5_i32 = arith.constant 5 : i32
      %c8_i32_51 = arith.constant 8 : i32
      %145 = arith.muli %c5_i32, %c8_i32_51 : i32
      %146 = tpu.assume_multiple %145, 8 : i32
      %147 = arith.index_cast %146 : i32 to index
      %c0_52 = arith.constant 0 : index
      %148 = vector.load %arg10[%147, %c0_52] : memref<64x128xf32, #tpu.memory_space<vmem>>, vector<8x128xf32>
      %149 = arith.truncf %144 : vector<8x32xf32> to vector<8x32xbf16>
      %cst_53 = arith.constant dense<0.000000e+00> : vector<8x128xf32>
      %150 = tpu.matmul %149, %31, %cst_53 {dimension_numbers = #tpu.dot_dimension_numbers<[1], [0], [0], [1], [0, 0, 1, 1], [], []>} : vector<8x32xbf16>, vector<32x128xbf16>, vector<8x128xf32> -> vector<8x128xf32>
      %151 = arith.addf %148, %150 : vector<8x128xf32>
      %152 = arith.negf %151 : vector<8x128xf32>
      %153 = math.exp %152 : vector<8x128xf32>
      %cst_54 = arith.constant 1.000000e+00 : f32
      %154 = vector.broadcast %cst_54 : f32 to vector<8x128xf32>
      %155 = arith.addf %154, %153 : vector<8x128xf32>
      %156 = arith.divf %154, %155 : vector<8x128xf32>
      %157 = math.tanh %151 : vector<8x128xf32>
      %158 = vector.extract_strided_slice %156 {offsets = [0, 0], sizes = [8, 32], strides = [1, 1]} : vector<8x128xf32> to vector<8x32xf32>
      %159 = vector.extract_strided_slice %156 {offsets = [0, 32], sizes = [8, 32], strides = [1, 1]} : vector<8x128xf32> to vector<8x32xf32>
      %160 = vector.extract_strided_slice %157 {offsets = [0, 64], sizes = [8, 32], strides = [1, 1]} : vector<8x128xf32> to vector<8x32xf32>
      %161 = vector.extract_strided_slice %156 {offsets = [0, 96], sizes = [8, 32], strides = [1, 1]} : vector<8x128xf32> to vector<8x32xf32>
      %162 = arith.mulf %159, %142 : vector<8x32xf32>
      %163 = arith.mulf %158, %160 : vector<8x32xf32>
      %164 = arith.addf %162, %163 : vector<8x32xf32>
      %165 = math.tanh %164 : vector<8x32xf32>
      %166 = arith.mulf %161, %165 : vector<8x32xf32>
      %c6_i32 = arith.constant 6 : i32
      %c8_i32_55 = arith.constant 8 : i32
      %167 = arith.muli %c6_i32, %c8_i32_55 : i32
      %168 = tpu.assume_multiple %167, 8 : i32
      %169 = arith.index_cast %168 : i32 to index
      %c0_56 = arith.constant 0 : index
      %170 = vector.load %arg10[%169, %c0_56] : memref<64x128xf32, #tpu.memory_space<vmem>>, vector<8x128xf32>
      %171 = arith.truncf %166 : vector<8x32xf32> to vector<8x32xbf16>
      %cst_57 = arith.constant dense<0.000000e+00> : vector<8x128xf32>
      %172 = tpu.matmul %171, %31, %cst_57 {dimension_numbers = #tpu.dot_dimension_numbers<[1], [0], [0], [1], [0, 0, 1, 1], [], []>} : vector<8x32xbf16>, vector<32x128xbf16>, vector<8x128xf32> -> vector<8x128xf32>
      %173 = arith.addf %170, %172 : vector<8x128xf32>
      %174 = arith.negf %173 : vector<8x128xf32>
      %175 = math.exp %174 : vector<8x128xf32>
      %cst_58 = arith.constant 1.000000e+00 : f32
      %176 = vector.broadcast %cst_58 : f32 to vector<8x128xf32>
      %177 = arith.addf %176, %175 : vector<8x128xf32>
      %178 = arith.divf %176, %177 : vector<8x128xf32>
      %179 = math.tanh %173 : vector<8x128xf32>
      %180 = vector.extract_strided_slice %178 {offsets = [0, 0], sizes = [8, 32], strides = [1, 1]} : vector<8x128xf32> to vector<8x32xf32>
      %181 = vector.extract_strided_slice %178 {offsets = [0, 32], sizes = [8, 32], strides = [1, 1]} : vector<8x128xf32> to vector<8x32xf32>
      %182 = vector.extract_strided_slice %179 {offsets = [0, 64], sizes = [8, 32], strides = [1, 1]} : vector<8x128xf32> to vector<8x32xf32>
      %183 = vector.extract_strided_slice %178 {offsets = [0, 96], sizes = [8, 32], strides = [1, 1]} : vector<8x128xf32> to vector<8x32xf32>
      %184 = arith.mulf %181, %164 : vector<8x32xf32>
      %185 = arith.mulf %180, %182 : vector<8x32xf32>
      %186 = arith.addf %184, %185 : vector<8x32xf32>
      %187 = math.tanh %186 : vector<8x32xf32>
      %188 = arith.mulf %183, %187 : vector<8x32xf32>
      %c7_i32 = arith.constant 7 : i32
      %c8_i32_59 = arith.constant 8 : i32
      %189 = arith.muli %c7_i32, %c8_i32_59 : i32
      %190 = tpu.assume_multiple %189, 8 : i32
      %191 = arith.index_cast %190 : i32 to index
      %c0_60 = arith.constant 0 : index
      %192 = vector.load %arg10[%191, %c0_60] : memref<64x128xf32, #tpu.memory_space<vmem>>, vector<8x128xf32>
      %193 = arith.truncf %188 : vector<8x32xf32> to vector<8x32xbf16>
      %cst_61 = arith.constant dense<0.000000e+00> : vector<8x128xf32>
      %194 = tpu.matmul %193, %31, %cst_61 {dimension_numbers = #tpu.dot_dimension_numbers<[1], [0], [0], [1], [0, 0, 1, 1], [], []>} : vector<8x32xbf16>, vector<32x128xbf16>, vector<8x128xf32> -> vector<8x128xf32>
      %195 = arith.addf %192, %194 : vector<8x128xf32>
      %196 = arith.negf %195 : vector<8x128xf32>
      %197 = math.exp %196 : vector<8x128xf32>
      %cst_62 = arith.constant 1.000000e+00 : f32
      %198 = vector.broadcast %cst_62 : f32 to vector<8x128xf32>
      %199 = arith.addf %198, %197 : vector<8x128xf32>
      %200 = arith.divf %198, %199 : vector<8x128xf32>
      %201 = math.tanh %195 : vector<8x128xf32>
      %202 = vector.extract_strided_slice %200 {offsets = [0, 0], sizes = [8, 32], strides = [1, 1]} : vector<8x128xf32> to vector<8x32xf32>
      %203 = vector.extract_strided_slice %200 {offsets = [0, 32], sizes = [8, 32], strides = [1, 1]} : vector<8x128xf32> to vector<8x32xf32>
      %204 = vector.extract_strided_slice %201 {offsets = [0, 64], sizes = [8, 32], strides = [1, 1]} : vector<8x128xf32> to vector<8x32xf32>
      %205 = vector.extract_strided_slice %200 {offsets = [0, 96], sizes = [8, 32], strides = [1, 1]} : vector<8x128xf32> to vector<8x32xf32>
      %206 = arith.mulf %203, %186 : vector<8x32xf32>
      %207 = arith.mulf %202, %204 : vector<8x32xf32>
      %208 = arith.addf %206, %207 : vector<8x32xf32>
      %209 = math.tanh %208 : vector<8x32xf32>
      %210 = arith.mulf %205, %209 : vector<8x32xf32>
      %c8_i32_63 = arith.constant 8 : i32
      %cst_64 = arith.constant 0.000000e+00 : f32
      %211 = vector.broadcast %cst_64 : f32 to vector<8x32xf32>
      %c0_65 = arith.constant 0 : index
      %c0_66 = arith.constant 0 : index
      %212 = vector.load %arg12[%c0_65, %c0_66] : memref<64x32xf32, #tpu.memory_space<vmem>>, vector<8x32xf32>
      tpu.vector_store %arg12[%c0_65, %c0_66], %211 {strides = array<i32>} : memref<64x32xf32, #tpu.memory_space<vmem>>, vector<8x32xf32>,
      %c1_i32_67 = arith.constant 1 : i32
      %c1_i32_68 = arith.constant 1 : i32
      %213 = arith.subi %c1_i32_67, %c1_i32_68 : i32
      %c8_i32_69 = arith.constant 8 : i32
      %214 = arith.muli %213, %c8_i32_69 : i32
      %215 = tpu.assume_multiple %214, 8 : i32
      %216 = arith.index_cast %215 : i32 to index
      %c0_70 = arith.constant 0 : index
      %217 = vector.load %arg11[%216, %c0_70] : memref<56x128xf32, #tpu.memory_space<vmem>>, vector<8x128xf32>
      %218 = arith.truncf %210 : vector<8x32xf32> to vector<8x32xbf16>
      %cst_71 = arith.constant dense<0.000000e+00> : vector<8x128xf32>
      %219 = tpu.matmul %218, %32, %cst_71 {dimension_numbers = #tpu.dot_dimension_numbers<[1], [0], [0], [1], [0, 0, 1, 1], [], []>} : vector<8x32xbf16>, vector<32x128xbf16>, vector<8x128xf32> -> vector<8x128xf32>
      %220 = arith.addf %217, %219 : vector<8x128xf32>
      %221 = arith.negf %220 : vector<8x128xf32>
      %222 = math.exp %221 : vector<8x128xf32>
      %cst_72 = arith.constant 1.000000e+00 : f32
      %223 = vector.broadcast %cst_72 : f32 to vector<8x128xf32>
      %224 = arith.addf %223, %222 : vector<8x128xf32>
      %225 = arith.divf %223, %224 : vector<8x128xf32>
      %226 = math.tanh %220 : vector<8x128xf32>
      %227 = vector.extract_strided_slice %225 {offsets = [0, 0], sizes = [8, 32], strides = [1, 1]} : vector<8x128xf32> to vector<8x32xf32>
      %228 = vector.extract_strided_slice %225 {offsets = [0, 32], sizes = [8, 32], strides = [1, 1]} : vector<8x128xf32> to vector<8x32xf32>
      %229 = vector.extract_strided_slice %226 {offsets = [0, 64], sizes = [8, 32], strides = [1, 1]} : vector<8x128xf32> to vector<8x32xf32>
      %230 = vector.extract_strided_slice %225 {offsets = [0, 96], sizes = [8, 32], strides = [1, 1]} : vector<8x128xf32> to vector<8x32xf32>
      %231 = arith.mulf %228, %208 : vector<8x32xf32>
      %232 = arith.mulf %227, %229 : vector<8x32xf32>
      %233 = arith.addf %231, %232 : vector<8x32xf32>
      %234 = math.tanh %233 : vector<8x32xf32>
      %235 = arith.mulf %230, %234 : vector<8x32xf32>
      %c8_i32_73 = arith.constant 8 : i32
      %236 = arith.muli %c1_i32_67, %c8_i32_73 : i32
      %237 = tpu.assume_multiple %236, 8 : i32
      %238 = arith.index_cast %237 : i32 to index
      %c0_74 = arith.constant 0 : index
      %239 = vector.load %arg12[%238, %c0_74] : memref<64x32xf32, #tpu.memory_space<vmem>>, vector<8x32xf32>
      tpu.vector_store %arg12[%238, %c0_74], %235 {strides = array<i32>} : memref<64x32xf32, #tpu.memory_space<vmem>>, vector<8x32xf32>,
      %c2_i32_75 = arith.constant 2 : i32
      %c1_i32_76 = arith.constant 1 : i32
      %240 = arith.subi %c2_i32_75, %c1_i32_76 : i32
      %c8_i32_77 = arith.constant 8 : i32
      %241 = arith.muli %240, %c8_i32_77 : i32
      %242 = tpu.assume_multiple %241, 8 : i32
      %243 = arith.index_cast %242 : i32 to index
      %c0_78 = arith.constant 0 : index
      %244 = vector.load %arg11[%243, %c0_78] : memref<56x128xf32, #tpu.memory_space<vmem>>, vector<8x128xf32>
      %245 = arith.truncf %235 : vector<8x32xf32> to vector<8x32xbf16>
      %cst_79 = arith.constant dense<0.000000e+00> : vector<8x128xf32>
      %246 = tpu.matmul %245, %32, %cst_79 {dimension_numbers = #tpu.dot_dimension_numbers<[1], [0], [0], [1], [0, 0, 1, 1], [], []>} : vector<8x32xbf16>, vector<32x128xbf16>, vector<8x128xf32> -> vector<8x128xf32>
      %247 = arith.addf %244, %246 : vector<8x128xf32>
      %248 = arith.negf %247 : vector<8x128xf32>
      %249 = math.exp %248 : vector<8x128xf32>
      %cst_80 = arith.constant 1.000000e+00 : f32
      %250 = vector.broadcast %cst_80 : f32 to vector<8x128xf32>
      %251 = arith.addf %250, %249 : vector<8x128xf32>
      %252 = arith.divf %250, %251 : vector<8x128xf32>
      %253 = math.tanh %247 : vector<8x128xf32>
      %254 = vector.extract_strided_slice %252 {offsets = [0, 0], sizes = [8, 32], strides = [1, 1]} : vector<8x128xf32> to vector<8x32xf32>
      %255 = vector.extract_strided_slice %252 {offsets = [0, 32], sizes = [8, 32], strides = [1, 1]} : vector<8x128xf32> to vector<8x32xf32>
      %256 = vector.extract_strided_slice %253 {offsets = [0, 64], sizes = [8, 32], strides = [1, 1]} : vector<8x128xf32> to vector<8x32xf32>
      %257 = vector.extract_strided_slice %252 {offsets = [0, 96], sizes = [8, 32], strides = [1, 1]} : vector<8x128xf32> to vector<8x32xf32>
      %258 = arith.mulf %255, %233 : vector<8x32xf32>
      %259 = arith.mulf %254, %256 : vector<8x32xf32>
      %260 = arith.addf %258, %259 : vector<8x32xf32>
      %261 = math.tanh %260 : vector<8x32xf32>
      %262 = arith.mulf %257, %261 : vector<8x32xf32>
      %c8_i32_81 = arith.constant 8 : i32
      %263 = arith.muli %c2_i32_75, %c8_i32_81 : i32
      %264 = tpu.assume_multiple %263, 8 : i32
      %265 = arith.index_cast %264 : i32 to index
      %c0_82 = arith.constant 0 : index
      %266 = vector.load %arg12[%265, %c0_82] : memref<64x32xf32, #tpu.memory_space<vmem>>, vector<8x32xf32>
      tpu.vector_store %arg12[%265, %c0_82], %262 {strides = array<i32>} : memref<64x32xf32, #tpu.memory_space<vmem>>, vector<8x32xf32>,
      %c3_i32_83 = arith.constant 3 : i32
      %c1_i32_84 = arith.constant 1 : i32
      %267 = arith.subi %c3_i32_83, %c1_i32_84 : i32
      %c8_i32_85 = arith.constant 8 : i32
      %268 = arith.muli %267, %c8_i32_85 : i32
      %269 = tpu.assume_multiple %268, 8 : i32
      %270 = arith.index_cast %269 : i32 to index
      %c0_86 = arith.constant 0 : index
      %271 = vector.load %arg11[%270, %c0_86] : memref<56x128xf32, #tpu.memory_space<vmem>>, vector<8x128xf32>
      %272 = arith.truncf %262 : vector<8x32xf32> to vector<8x32xbf16>
      %cst_87 = arith.constant dense<0.000000e+00> : vector<8x128xf32>
      %273 = tpu.matmul %272, %32, %cst_87 {dimension_numbers = #tpu.dot_dimension_numbers<[1], [0], [0], [1], [0, 0, 1, 1], [], []>} : vector<8x32xbf16>, vector<32x128xbf16>, vector<8x128xf32> -> vector<8x128xf32>
      %274 = arith.addf %271, %273 : vector<8x128xf32>
      %275 = arith.negf %274 : vector<8x128xf32>
      %276 = math.exp %275 : vector<8x128xf32>
      %cst_88 = arith.constant 1.000000e+00 : f32
      %277 = vector.broadcast %cst_88 : f32 to vector<8x128xf32>
      %278 = arith.addf %277, %276 : vector<8x128xf32>
      %279 = arith.divf %277, %278 : vector<8x128xf32>
      %280 = math.tanh %274 : vector<8x128xf32>
      %281 = vector.extract_strided_slice %279 {offsets = [0, 0], sizes = [8, 32], strides = [1, 1]} : vector<8x128xf32> to vector<8x32xf32>
      %282 = vector.extract_strided_slice %279 {offsets = [0, 32], sizes = [8, 32], strides = [1, 1]} : vector<8x128xf32> to vector<8x32xf32>
      %283 = vector.extract_strided_slice %280 {offsets = [0, 64], sizes = [8, 32], strides = [1, 1]} : vector<8x128xf32> to vector<8x32xf32>
      %284 = vector.extract_strided_slice %279 {offsets = [0, 96], sizes = [8, 32], strides = [1, 1]} : vector<8x128xf32> to vector<8x32xf32>
      %285 = arith.mulf %282, %260 : vector<8x32xf32>
      %286 = arith.mulf %281, %283 : vector<8x32xf32>
      %287 = arith.addf %285, %286 : vector<8x32xf32>
      %288 = math.tanh %287 : vector<8x32xf32>
      %289 = arith.mulf %284, %288 : vector<8x32xf32>
      %c8_i32_89 = arith.constant 8 : i32
      %290 = arith.muli %c3_i32_83, %c8_i32_89 : i32
      %291 = tpu.assume_multiple %290, 8 : i32
      %292 = arith.index_cast %291 : i32 to index
      %c0_90 = arith.constant 0 : index
      %293 = vector.load %arg12[%292, %c0_90] : memref<64x32xf32, #tpu.memory_space<vmem>>, vector<8x32xf32>
      tpu.vector_store %arg12[%292, %c0_90], %289 {strides = array<i32>} : memref<64x32xf32, #tpu.memory_space<vmem>>, vector<8x32xf32>,
      %c4_i32_91 = arith.constant 4 : i32
      %c1_i32_92 = arith.constant 1 : i32
      %294 = arith.subi %c4_i32_91, %c1_i32_92 : i32
      %c8_i32_93 = arith.constant 8 : i32
      %295 = arith.muli %294, %c8_i32_93 : i32
      %296 = tpu.assume_multiple %295, 8 : i32
      %297 = arith.index_cast %296 : i32 to index
      %c0_94 = arith.constant 0 : index
      %298 = vector.load %arg11[%297, %c0_94] : memref<56x128xf32, #tpu.memory_space<vmem>>, vector<8x128xf32>
      %299 = arith.truncf %289 : vector<8x32xf32> to vector<8x32xbf16>
      %cst_95 = arith.constant dense<0.000000e+00> : vector<8x128xf32>
      %300 = tpu.matmul %299, %32, %cst_95 {dimension_numbers = #tpu.dot_dimension_numbers<[1], [0], [0], [1], [0, 0, 1, 1], [], []>} : vector<8x32xbf16>, vector<32x128xbf16>, vector<8x128xf32> -> vector<8x128xf32>
      %301 = arith.addf %298, %300 : vector<8x128xf32>
      %302 = arith.negf %301 : vector<8x128xf32>
      %303 = math.exp %302 : vector<8x128xf32>
      %cst_96 = arith.constant 1.000000e+00 : f32
      %304 = vector.broadcast %cst_96 : f32 to vector<8x128xf32>
      %305 = arith.addf %304, %303 : vector<8x128xf32>
      %306 = arith.divf %304, %305 : vector<8x128xf32>
      %307 = math.tanh %301 : vector<8x128xf32>
      %308 = vector.extract_strided_slice %306 {offsets = [0, 0], sizes = [8, 32], strides = [1, 1]} : vector<8x128xf32> to vector<8x32xf32>
      %309 = vector.extract_strided_slice %306 {offsets = [0, 32], sizes = [8, 32], strides = [1, 1]} : vector<8x128xf32> to vector<8x32xf32>
      %310 = vector.extract_strided_slice %307 {offsets = [0, 64], sizes = [8, 32], strides = [1, 1]} : vector<8x128xf32> to vector<8x32xf32>
      %311 = vector.extract_strided_slice %306 {offsets = [0, 96], sizes = [8, 32], strides = [1, 1]} : vector<8x128xf32> to vector<8x32xf32>
      %312 = arith.mulf %309, %287 : vector<8x32xf32>
      %313 = arith.mulf %308, %310 : vector<8x32xf32>
      %314 = arith.addf %312, %313 : vector<8x32xf32>
      %315 = math.tanh %314 : vector<8x32xf32>
      %316 = arith.mulf %311, %315 : vector<8x32xf32>
      %c8_i32_97 = arith.constant 8 : i32
      %317 = arith.muli %c4_i32_91, %c8_i32_97 : i32
      %318 = tpu.assume_multiple %317, 8 : i32
      %319 = arith.index_cast %318 : i32 to index
      %c0_98 = arith.constant 0 : index
      %320 = vector.load %arg12[%319, %c0_98] : memref<64x32xf32, #tpu.memory_space<vmem>>, vector<8x32xf32>
      tpu.vector_store %arg12[%319, %c0_98], %316 {strides = array<i32>} : memref<64x32xf32, #tpu.memory_space<vmem>>, vector<8x32xf32>,
      %c5_i32_99 = arith.constant 5 : i32
      %c1_i32_100 = arith.constant 1 : i32
      %321 = arith.subi %c5_i32_99, %c1_i32_100 : i32
      %c8_i32_101 = arith.constant 8 : i32
      %322 = arith.muli %321, %c8_i32_101 : i32
      %323 = tpu.assume_multiple %322, 8 : i32
      %324 = arith.index_cast %323 : i32 to index
      %c0_102 = arith.constant 0 : index
      %325 = vector.load %arg11[%324, %c0_102] : memref<56x128xf32, #tpu.memory_space<vmem>>, vector<8x128xf32>
      %326 = arith.truncf %316 : vector<8x32xf32> to vector<8x32xbf16>
      %cst_103 = arith.constant dense<0.000000e+00> : vector<8x128xf32>
      %327 = tpu.matmul %326, %32, %cst_103 {dimension_numbers = #tpu.dot_dimension_numbers<[1], [0], [0], [1], [0, 0, 1, 1], [], []>} : vector<8x32xbf16>, vector<32x128xbf16>, vector<8x128xf32> -> vector<8x128xf32>
      %328 = arith.addf %325, %327 : vector<8x128xf32>
      %329 = arith.negf %328 : vector<8x128xf32>
      %330 = math.exp %329 : vector<8x128xf32>
      %cst_104 = arith.constant 1.000000e+00 : f32
      %331 = vector.broadcast %cst_104 : f32 to vector<8x128xf32>
      %332 = arith.addf %331, %330 : vector<8x128xf32>
      %333 = arith.divf %331, %332 : vector<8x128xf32>
      %334 = math.tanh %328 : vector<8x128xf32>
      %335 = vector.extract_strided_slice %333 {offsets = [0, 0], sizes = [8, 32], strides = [1, 1]} : vector<8x128xf32> to vector<8x32xf32>
      %336 = vector.extract_strided_slice %333 {offsets = [0, 32], sizes = [8, 32], strides = [1, 1]} : vector<8x128xf32> to vector<8x32xf32>
      %337 = vector.extract_strided_slice %334 {offsets = [0, 64], sizes = [8, 32], strides = [1, 1]} : vector<8x128xf32> to vector<8x32xf32>
      %338 = vector.extract_strided_slice %333 {offsets = [0, 96], sizes = [8, 32], strides = [1, 1]} : vector<8x128xf32> to vector<8x32xf32>
      %339 = arith.mulf %336, %314 : vector<8x32xf32>
      %340 = arith.mulf %335, %337 : vector<8x32xf32>
      %341 = arith.addf %339, %340 : vector<8x32xf32>
      %342 = math.tanh %341 : vector<8x32xf32>
      %343 = arith.mulf %338, %342 : vector<8x32xf32>
      %c8_i32_105 = arith.constant 8 : i32
      %344 = arith.muli %c5_i32_99, %c8_i32_105 : i32
      %345 = tpu.assume_multiple %344, 8 : i32
      %346 = arith.index_cast %345 : i32 to index
      %c0_106 = arith.constant 0 : index
      %347 = vector.load %arg12[%346, %c0_106] : memref<64x32xf32, #tpu.memory_space<vmem>>, vector<8x32xf32>
      tpu.vector_store %arg12[%346, %c0_106], %343 {strides = array<i32>} : memref<64x32xf32, #tpu.memory_space<vmem>>, vector<8x32xf32>,
      %c6_i32_107 = arith.constant 6 : i32
      %c1_i32_108 = arith.constant 1 : i32
      %348 = arith.subi %c6_i32_107, %c1_i32_108 : i32
      %c8_i32_109 = arith.constant 8 : i32
      %349 = arith.muli %348, %c8_i32_109 : i32
      %350 = tpu.assume_multiple %349, 8 : i32
      %351 = arith.index_cast %350 : i32 to index
      %c0_110 = arith.constant 0 : index
      %352 = vector.load %arg11[%351, %c0_110] : memref<56x128xf32, #tpu.memory_space<vmem>>, vector<8x128xf32>
      %353 = arith.truncf %343 : vector<8x32xf32> to vector<8x32xbf16>
      %cst_111 = arith.constant dense<0.000000e+00> : vector<8x128xf32>
      %354 = tpu.matmul %353, %32, %cst_111 {dimension_numbers = #tpu.dot_dimension_numbers<[1], [0], [0], [1], [0, 0, 1, 1], [], []>} : vector<8x32xbf16>, vector<32x128xbf16>, vector<8x128xf32> -> vector<8x128xf32>
      %355 = arith.addf %352, %354 : vector<8x128xf32>
      %356 = arith.negf %355 : vector<8x128xf32>
      %357 = math.exp %356 : vector<8x128xf32>
      %cst_112 = arith.constant 1.000000e+00 : f32
      %358 = vector.broadcast %cst_112 : f32 to vector<8x128xf32>
      %359 = arith.addf %358, %357 : vector<8x128xf32>
      %360 = arith.divf %358, %359 : vector<8x128xf32>
      %361 = math.tanh %355 : vector<8x128xf32>
      %362 = vector.extract_strided_slice %360 {offsets = [0, 0], sizes = [8, 32], strides = [1, 1]} : vector<8x128xf32> to vector<8x32xf32>
      %363 = vector.extract_strided_slice %360 {offsets = [0, 32], sizes = [8, 32], strides = [1, 1]} : vector<8x128xf32> to vector<8x32xf32>
      %364 = vector.extract_strided_slice %361 {offsets = [0, 64], sizes = [8, 32], strides = [1, 1]} : vector<8x128xf32> to vector<8x32xf32>
      %365 = vector.extract_strided_slice %360 {offsets = [0, 96], sizes = [8, 32], strides = [1, 1]} : vector<8x128xf32> to vector<8x32xf32>
      %366 = arith.mulf %363, %341 : vector<8x32xf32>
      %367 = arith.mulf %362, %364 : vector<8x32xf32>
      %368 = arith.addf %366, %367 : vector<8x32xf32>
      %369 = math.tanh %368 : vector<8x32xf32>
      %370 = arith.mulf %365, %369 : vector<8x32xf32>
      %c8_i32_113 = arith.constant 8 : i32
      %371 = arith.muli %c6_i32_107, %c8_i32_113 : i32
      %372 = tpu.assume_multiple %371, 8 : i32
      %373 = arith.index_cast %372 : i32 to index
      %c0_114 = arith.constant 0 : index
      %374 = vector.load %arg12[%373, %c0_114] : memref<64x32xf32, #tpu.memory_space<vmem>>, vector<8x32xf32>
      tpu.vector_store %arg12[%373, %c0_114], %370 {strides = array<i32>} : memref<64x32xf32, #tpu.memory_space<vmem>>, vector<8x32xf32>,
      %c7_i32_115 = arith.constant 7 : i32
      %c1_i32_116 = arith.constant 1 : i32
      %375 = arith.subi %c7_i32_115, %c1_i32_116 : i32
      %c8_i32_117 = arith.constant 8 : i32
      %376 = arith.muli %375, %c8_i32_117 : i32
      %377 = tpu.assume_multiple %376, 8 : i32
      %378 = arith.index_cast %377 : i32 to index
      %c0_118 = arith.constant 0 : index
      %379 = vector.load %arg11[%378, %c0_118] : memref<56x128xf32, #tpu.memory_space<vmem>>, vector<8x128xf32>
      %380 = arith.truncf %370 : vector<8x32xf32> to vector<8x32xbf16>
      %cst_119 = arith.constant dense<0.000000e+00> : vector<8x128xf32>
      %381 = tpu.matmul %380, %32, %cst_119 {dimension_numbers = #tpu.dot_dimension_numbers<[1], [0], [0], [1], [0, 0, 1, 1], [], []>} : vector<8x32xbf16>, vector<32x128xbf16>, vector<8x128xf32> -> vector<8x128xf32>
      %382 = arith.addf %379, %381 : vector<8x128xf32>
      %383 = arith.negf %382 : vector<8x128xf32>
      %384 = math.exp %383 : vector<8x128xf32>
      %cst_120 = arith.constant 1.000000e+00 : f32
      %385 = vector.broadcast %cst_120 : f32 to vector<8x128xf32>
      %386 = arith.addf %385, %384 : vector<8x128xf32>
      %387 = arith.divf %385, %386 : vector<8x128xf32>
      %388 = math.tanh %382 : vector<8x128xf32>
      %389 = vector.extract_strided_slice %387 {offsets = [0, 0], sizes = [8, 32], strides = [1, 1]} : vector<8x128xf32> to vector<8x32xf32>
      %390 = vector.extract_strided_slice %387 {offsets = [0, 32], sizes = [8, 32], strides = [1, 1]} : vector<8x128xf32> to vector<8x32xf32>
      %391 = vector.extract_strided_slice %388 {offsets = [0, 64], sizes = [8, 32], strides = [1, 1]} : vector<8x128xf32> to vector<8x32xf32>
      %392 = vector.extract_strided_slice %387 {offsets = [0, 96], sizes = [8, 32], strides = [1, 1]} : vector<8x128xf32> to vector<8x32xf32>
      %393 = arith.mulf %390, %368 : vector<8x32xf32>
      %394 = arith.mulf %389, %391 : vector<8x32xf32>
      %395 = arith.addf %393, %394 : vector<8x32xf32>
      %396 = math.tanh %395 : vector<8x32xf32>
      %397 = arith.mulf %392, %396 : vector<8x32xf32>
      %c8_i32_121 = arith.constant 8 : i32
      %398 = arith.muli %c7_i32_115, %c8_i32_121 : i32
      %399 = tpu.assume_multiple %398, 8 : i32
      %400 = arith.index_cast %399 : i32 to index
      %c0_122 = arith.constant 0 : index
      %401 = vector.load %arg12[%400, %c0_122] : memref<64x32xf32, #tpu.memory_space<vmem>>, vector<8x32xf32>
      tpu.vector_store %arg12[%400, %c0_122], %397 {strides = array<i32>} : memref<64x32xf32, #tpu.memory_space<vmem>>, vector<8x32xf32>,
      %c7_i32_123 = arith.constant 7 : i32
    } else {
    }
    %c0 = arith.constant 0 : index
    %c0_1 = arith.constant 0 : index
    %3 = vector.load %arg12[%c0, %c0_1] : memref<64x32xf32, #tpu.memory_space<vmem>>, vector<64x32xf32>
    %4 = arith.truncf %3 : vector<64x32xf32> to vector<64x32xbf16>
    %c0_2 = arith.constant 0 : index
    %c0_3 = arith.constant 0 : index
    %5 = vector.load %arg7[%c0_2, %c0_3] : memref<32x128xbf16, #tpu.memory_space<vmem>>, vector<32x128xbf16>
    %cst = arith.constant dense<0.000000e+00> : vector<64x128xf32>
    %6 = tpu.matmul %4, %5, %cst {dimension_numbers = #tpu.dot_dimension_numbers<[1], [0], [0], [1], [0, 0, 1, 1], [], []>} : vector<64x32xbf16>, vector<32x128xbf16>, vector<64x128xf32> -> vector<64x128xf32>
    %c0_4 = arith.constant 0 : index
    %c0_5 = arith.constant 0 : index
    %7 = vector.load %arg8[%c0_4, %c0_5] : memref<1x128xf32, #tpu.memory_space<vmem>>, vector<1x128xf32>
    %8 = vector.broadcast %7 : vector<1x128xf32> to vector<64x128xf32>
    %9 = arith.addf %6, %8 : vector<64x128xf32>
    %c0_6 = arith.constant 0 : index
    %c0_7 = arith.constant 0 : index
    %10 = vector.load %arg9[%c0_6, %c0_7] : memref<64x128xf32, #tpu.memory_space<vmem>>, vector<64x128xf32>
    tpu.vector_store %arg9[%c0_6, %c0_7], %9 {strides = array<i32>} : memref<64x128xf32, #tpu.memory_space<vmem>>, vector<64x128xf32>,
    %cst_8 = arith.constant 0.000000e+00 : f32
    %11 = vector.broadcast %cst_8 : f32 to vector<8x128xf32>
    %c0_9 = arith.constant 0 : index
    %c0_10 = arith.constant 0 : index
    %12 = vector.load %arg9[%c0_9, %c0_10] : memref<64x128xf32, #tpu.memory_space<vmem>>, vector<8x128xf32>
    tpu.vector_store %arg9[%c0_9, %c0_10], %11 {strides = array<i32>} : memref<64x128xf32, #tpu.memory_space<vmem>>, vector<8x128xf32>,
    return
  }
  func.func @transform_0(%arg0: i32) -> (i32, i32) {
    %c0_i32 = arith.constant 0 : i32
    %c0_i32_0 = arith.constant 0 : i32
    %c0_i32_1 = arith.constant 0 : i32
    return %c0_i32, %c0_i32_0 : i32, i32
  }
  func.func @transform_1(%arg0: i32) -> (i32, i32) {
    %c0_i32 = arith.constant 0 : i32
    %c0_i32_0 = arith.constant 0 : i32
    %c0_i32_1 = arith.constant 0 : i32
    return %c0_i32, %c0_i32_0 : i32, i32
  }
  func.func @transform_2(%arg0: i32) -> (i32, i32) {
    %c0_i32 = arith.constant 0 : i32
    %c0_i32_0 = arith.constant 0 : i32
    %c0_i32_1 = arith.constant 0 : i32
    return %c0_i32, %c0_i32_0 : i32, i32
  }
  func.func @transform_3(%arg0: i32) -> (i32, i32) {
    %c0_i32 = arith.constant 0 : i32
    %c0_i32_0 = arith.constant 0 : i32
    %c0_i32_1 = arith.constant 0 : i32
    return %c0_i32, %c0_i32_0 : i32, i32
  }
  func.func @transform_4(%arg0: i32) -> (i32, i32) {
    %c0_i32 = arith.constant 0 : i32
    %c0_i32_0 = arith.constant 0 : i32
    %c0_i32_1 = arith.constant 0 : i32
    return %c0_i32, %c0_i32_0 : i32, i32
  }
  func.func @transform_5(%arg0: i32) -> (i32, i32) {
    %c0_i32 = arith.constant 0 : i32
    %c0_i32_0 = arith.constant 0 : i32
    %c0_i32_1 = arith.constant 0 : i32
    return %c0_i32, %c0_i32_0 : i32, i32
  }
  func.func @transform_6(%arg0: i32) -> (i32, i32) {
    %c0_i32 = arith.constant 0 : i32
    %c0_i32_0 = arith.constant 0 : i32
    return %c0_i32, %arg0 : i32, i32
  }
  func.func @transform_7(%arg0: i32) -> (i32, i32) {
    %c0_i32 = arith.constant 0 : i32
    %c0_i32_0 = arith.constant 0 : i32
    return %c0_i32, %arg0 : i32, i32
  }
  func.func @transform_8(%arg0: i32) -> (i32, i32) {
    %c0_i32 = arith.constant 0 : i32
    %c0_i32_0 = arith.constant 0 : i32
    return %c0_i32, %arg0 : i32, i32
  }
}

</mosaic_0001>

<bundles_post_ra>
// kernel: tpu_custom_call.1
= control target key start
LH: loop header
LB: loop body
LE: loop exit
PB: predicated region body
PF: predicated region fallthrough
CT: control target
= control target key end

     0   :  { %13 = vsyncpa [#allocation6], 0  ;;  %s2028_s0 = inlined_call_operand.vmem [shape: s32[64,1], index: 0, kind: input, shape index: {}]   ;;  %s2029_s1 = inlined_call_operand.hbm [shape: f32[128,128], index: 1, kind: input, shape index: {}]   ;;  %s2030_s2 = inlined_call_operand.vmem [shape: s32[56,1], index: 2, kind: input, shape index: {}]   ;;  %s2031_s3 = inlined_call_operand.hbm [shape: f32[128,128], index: 3, kind: input, shape index: {}]   ;;  %s2032_s4 = inlined_call_operand.vmem [shape: bf16[32,128], index: 4, kind: input, shape index: {}]   ;;  %s2033_s5 = inlined_call_operand.vmem [shape: bf16[32,128], index: 5, kind: input, shape index: {}]   ;;  %s2034_s6 = inlined_call_operand.vmem [shape: bf16[32,128], index: 6, kind: input, shape index: {}]   ;;  %s2035_s7 = inlined_call_operand.vmem [shape: f32[1,128], index: 7, kind: input, shape index: {}]   ;;  %s2036_s8 = inlined_call_operand.hbm [shape: f32[64,128], index: 8, kind: output, shape index: {}]  }
   0x1   :  { %14 = vsyncpa [#allocation9], 0 }
   0x2   :  { %15 = vsyncpa [#allocation7], 0  ;;  %s22_s29 = sshll.u32 %s2029_s1, 4  ;;  %s1680_s30 = smov [#allocation5]   ;;  %s23_s29 = int_to_ptr.hbm [resolvable:$true] %s22_s29 }
   0x3   :  { %s24_s9 = sshll.u32 %s1680_s30, 4  ;;  %s37_s12 = sshll.u32 %s2031_s3, 4  ;;  %s25_s9 = int_to_ptr.vmem [resolvable:$true] %s24_s9  ;;  %s38_s12 = int_to_ptr.hbm [resolvable:$true] %s37_s12 }
   0x4   :  { %s1681_s13 = smov 128   ;;  %s1682_s14 = smov 8  }
   0x5   :  { %30 = dma.hbm_to_vmem [thread:$0]  %s23_s29, 2048, %s25_s9, [#allocation6], %s1681_s13, %s1681_s13, %s1682_s14  }
   0x6   :  { %s1683_s15 = smov [#allocation8]  }
   0x7   :  { %s39_s16 = sshll.u32 %s1683_s15, 4  ;;  %s40_s16 = int_to_ptr.vmem [resolvable:$true] %s39_s16 }
   0x8   :  { %45 = dma.hbm_to_vmem [thread:$0]  %s38_s12, 2048, %s40_s16, [#allocation9], %s1681_s13, %s1681_s13, %s1682_s14  }
   0x9   :  { %1674 = dma.done.wait [#allocation6], 2048  }
   0xa   :  { %1675 = vsyncadd [#allocation6], 4294965248 }
   0xb   :  { %1676 = dma.done.wait [#allocation9], 2048  }
   0xc   :  { %1677 = vsyncadd [#allocation9], 4294965248  ;;  %v1684_v0 = vmov 0   ;;  %v69_v1 = vld [vmem:[%s2028_s0 + $0x10] sm:$0xff]  ;;  %v67_v2 = vld [vmem:[%s2028_s0] sm:$0xff]  ;;  %v75_v26 = vlaneseq  ;;  %v1685_v29 = vmov 1.0  }
   0xd   :  { %1479 = vset.pattern.permute.xlu1 %v1684_v0  ;;  %1478 = vset.pattern.permute.xlu0 %v1684_v0  ;;  %v71_v3 = vld [vmem:[%s2028_s0 + $0x20] sm:$0xff]  ;;  %v140_v4 = vld [vmem:[#allocation5 + $0x78] sm:$0xff]  ;;  %v139_v5 = vld [vmem:[#allocation5 + $0x70] sm:$0xff]  ;;  %s1687_s12 = smov 32   ;;  %vm321_vm12 = vcmask 261120   ;;  %s1359_s15 = sshll.u32 %s2036_s8, 4  ;;  %s1360_s15 = int_to_ptr.hbm [resolvable:$true] %s1359_s15 }
   0xe   :  { %1480 = vset.pattern.permute.xlu2 %v1684_v0  ;;  %84 = vperm.xlu1 %1479, %v69_v1   ;;  %v138_v6 = vld [vmem:[#allocation5 + $0x68] sm:$0xff]  ;;  %v70_v7 = vld [vmem:[%s2028_s0 + $0x18] sm:$0xff]  ;;  %v137_v9 = vld [vmem:[#allocation5 + $0x60] sm:$0xff]  ;;  %v1782_v27 = vand.u32 127, %v75_v26 }
   0xf   :  { %78 = vperm.xlu0 %1478, %v67_v2   ;;  %90 = vperm.xlu2 %1480, %v71_v3   ;;  %v68_v8 = vld [vmem:[%s2028_s0 + $0x8] sm:$0xff]  ;;  %v136_v11 = vld [vmem:[#allocation5 + $0x58] sm:$0xff]  ;;  %v135_v12 = vld [vmem:[#allocation5 + $0x50] sm:$0xff] }
  0x10   :  { %141 = vmatpush.msra.mxu0 %v140_v4  ;;  %v72_v10 = vld [vmem:[%s2028_s0 + $0x28] sm:$0xff]  ;;  %v74_v14 = vld [vmem:[%s2028_s0 + $0x38] sm:$0xff]  ;;  %v73_v15 = vld [vmem:[%s2028_s0 + $0x30] sm:$0xff] }
  0x11   :  { %v134_v13 = vld [vmem:[#allocation5 + $0x48] sm:$0xff]  ;;  %v133_v16 = vld [vmem:[#allocation5 + $0x40] sm:$0xff]  ;;  %v132_v17 = vld [vmem:[#allocation5 + $0x38] sm:$0xff] }
  0x12   :  { %142 = vmatpush.msra.mxu0 %v139_v5  ;;  %v131_v18 = vld [vmem:[#allocation5 + $0x30] sm:$0xff]  ;;  %v130_v19 = vld [vmem:[#allocation5 + $0x28] sm:$0xff]  ;;  %v129_v20 = vld [vmem:[#allocation5 + $0x20] sm:$0xff] }
  0x13   :  { %v128_v21 = vld [vmem:[#allocation5 + $0x18] sm:$0xff]  ;;  %v127_v22 = vld [vmem:[#allocation5 + $0x10] sm:$0xff]  ;;  %v126_v23 = vld [vmem:[#allocation5 + $0x8] sm:$0xff] }
  0x14   :  { %143 = vmatpush.msra.mxu0 %v138_v6  ;;  %v125_v24 = vld [vmem:[#allocation5] sm:$0xff]  ;;  %v1777_v25 = vld [vmem:[%s2032_s4 + $0x8] sm:$0xff] }
  0x15   :  { %391 = vmatpush.bf16.msra.mxu3 %v1777_v25  ;;  %451 = vmatpush.bf16.msra.mxu2 %v1777_v25  ;;  %v1789_v30 = vld [vmem:[%s2032_s4] sm:$0xff]  ;;  %s1686_s4 = smov 64  }
  0x16   :  { %87 = vperm.xlu1 %1479, %v70_v7   ;;  %144 = vmatpush.msra.mxu0 %v137_v9 }
  0x17   :  { %81 = vperm.xlu0 %1478, %v68_v8   ;;  %93 = vperm.xlu2 %1480, %v72_v10  }
  0x18   :  { %145 = vmatpush.msra.mxu0 %v136_v11 }
  0x19   :  { %392 = vmatpush.bf16.msra.mxu3 %v1789_v30  ;;  %452 = vmatpush.bf16.msra.mxu2 %v1789_v30 }
  0x1a   :  { %146 = vmatpush.msra.mxu0 %v135_v12 }
  0x1c   :  { %147 = vmatpush.msra.mxu0 %v134_v13 }
  0x1d   :  { %511 = vmatpush.bf16.msrb.mxu3 %v1777_v25  ;;  %571 = vmatpush.bf16.msrb.mxu2 %v1777_v25 }
  0x1e   :  { %99 = vperm.xlu1 %1479, %v74_v14   ;;  %148 = vmatpush.msra.mxu0 %v133_v16 }
  0x1f   :  { %96 = vperm.xlu0 %1478, %v73_v15  }
  0x20   :  { %149 = vmatpush.msra.mxu0 %v132_v17 }
  0x21   :  { %512 = vmatpush.bf16.msrb.mxu3 %v1789_v30  ;;  %572 = vmatpush.bf16.msrb.mxu2 %v1789_v30 }
  0x22   :  { %150 = vmatpush.msra.mxu0 %v131_v18 }
  0x24   :  { %151 = vmatpush.msra.mxu0 %v130_v19 }
  0x26   :  { %152 = vmatpush.msra.mxu0 %v129_v20 }
  0x28   :  { %153 = vmatpush.msra.mxu0 %v128_v21 }
  0x2a   :  { %154 = vmatpush.msra.mxu0 %v127_v22 }
  0x2c   :  { %155 = vmatpush.msra.mxu0 %v126_v23 }
  0x2e   :  { %156 = vmatpush.msra.mxu0 %v125_v24 }
  0x30   :  { %331 = vmatpush.bf16.msrb.mxu0 %v1777_v25 }
  0x34   :  { %332 = vmatpush.bf16.msrb.mxu0 %v1789_v30 }
  0x69   :  { %v91_v34 = vpop.permute.xlu2 %90 }
  0x6a   :  { %vm105_vm4 = vcmp.eq.s32.totalorder %v91_v34, %v1782_v27 }
  0x71   :  { %v94_v35 = vpop.permute.xlu2 %93 }
  0x72   :  { %vm106_vm5 = vcmp.eq.s32.totalorder %v94_v35, %v1782_v27 }
  0x80   :  { %v85_v32 = vpop.permute.xlu1 %84 }
  0x81   :  { %v79_v28 = vpop.permute.xlu0 %78  ;;  %vm103_vm2 = vcmp.eq.s32.totalorder %v85_v32, %v1782_v27 }
  0x82   :  { %vm101_vm0 = vcmp.eq.s32.totalorder %v79_v28, %v1782_v27 }
  0x83   :  { %1381 = vmatmul.msk.f32.vlgmr.msra.gmra.mxu0 %vm101_vm0, %v1685_v29 }
  0x88   :  { %v88_v33 = vpop.permute.xlu1 %87 }
  0x89   :  { %v82_v31 = vpop.permute.xlu0 %81  ;;  %vm104_vm3 = vcmp.eq.s32.totalorder %v88_v33, %v1782_v27 }
  0x8a   :  { %vm102_vm1 = vcmp.eq.s32.totalorder %v82_v31, %v1782_v27 }
  0x8b   :  { %1382 = vmatmul.msk.f32.gmra.mxu0 %vm102_vm1, %v1685_v29 }
  0x90   :  { %v100_v37 = vpop.permute.xlu1 %99 }
  0x91   :  { %v97_v36 = vpop.permute.xlu0 %96  ;;  %vm108_vm7 = vcmp.eq.s32.totalorder %v100_v37, %v1782_v27 }
  0x92   :  { %vm107_vm6 = vcmp.eq.s32.totalorder %v97_v36, %v1782_v27 }
  0x93   :  { %1383 = vmatmul.msk.f32.gmra.mxu0 %vm103_vm2, %v1685_v29 }
  0x9b   :  { %1384 = vmatmul.msk.f32.gmra.mxu0 %vm104_vm3, %v1685_v29 }
  0xa3   :  { %1385 = vmatmul.msk.f32.gmra.mxu0 %vm105_vm4, %v1685_v29 }
  0xab   :  { %1386 = vmatmul.msk.f32.gmra.mxu0 %vm106_vm5, %v1685_v29 }
  0xb3   :  { %1387 = vmatmul.msk.f32.gmra.mxu0 %vm107_vm6, %v1685_v29 }
  0xbb   :  { %1388 = vmatmul.msk.f32.gmra.mxu0 %vm108_vm7, %v1685_v29 }
  0xc3   :  { %333 = vmatmul.bf16.vlgmr.msrb.gmra.mxu0 %v1684_v0 }
 0x100   :  { %v158_v38 = vpop.f32.mrf.mxu0 }
 0x108   :  { %v161_v39 = vpop.f32.mrf.mxu0 }
 0x110   :  { %v1813_v40 = vpop.f32.mrf.mxu0 }
 0x118   :  { %v1815_v41 = vpop.f32.mrf.mxu0 }
 0x120   :  { %v1817_v42 = vpop.f32.mrf.mxu0 }
 0x128   :  { %v1819_v43 = vpop.f32.mrf.mxu0 }
 0x130   :  { %v1821_v44 = vpop.f32.mrf.mxu0 }
 0x138   :  { %v1823_v45 = vpop.f32.mrf.mxu0 }
 0x140   :  { %v334_v46 = vpop.f32.mrf.mxu0 }
 0x141   :  { %v338_v47 = vadd.f32 %v334_v46, %v158_v38 }
 0x143   :  { %1482 = vtanh.f32 %v338_v47  ;;  %v1411_v50 = vmul.f32 -1.442695, %v338_v47 }
 0x145   :  { %1484 = vpow2.f32 %v1411_v50 }
 0x148   :  { %v336_v48 = vpop.f32.mrf.mxu0 }
 0x149   :  { %v1483_v49 = vpop.eup %1482 }
 0x14a   :  { %361 = vrot.lane.b32.xlu2 %v1483_v49, %s1686_s4 }
 0x14b   :  { %v1485_v51 = vpop.eup %1484 }
 0x14c   :  { %v342_v52 = vadd.f32 1.0, %v1485_v51 }
 0x14e   :  { %1486 = vrcp.f32 %v342_v52  ;;  %v354_v58 = vand.u32 2147483648, %v342_v52  ;;  %vm348_vm9 = vweird.f32 %v342_v52  ;;  %v352_v59 = vand.u32 2147483647, %v342_v52 }
 0x150   :  { %v355_v61 = vor.u32 1.1754944e-38, %v354_v58  ;;  %vm353_vm11 = vcmp.eq.f32.partialorder %v352_v59, 8.507059e+37 }
 0x154   :  { %v1487_v53 = vpop.eup %1486 }
 0x155   :  { %v344_v54 = vmul.f32 %v1487_v53, %v342_v52  ;;  %vm349_vm8 = vweird.f32 %v1487_v53 }
 0x156   :  { %vm350_vm10 = vmor %vm348_vm9, %vm349_vm8 }
 0x157   :  { %v345_v55 = vsub.f32 1.0, %v344_v54 }
 0x159   :  { %v346_v56 = vmul.f32 %v1487_v53, %v345_v55 }
 0x15b   :  { %v347_v57 = vadd.f32 %v1487_v53, %v346_v56 }
 0x15d   :  { %v351_v60 = vsel %vm350_vm10, %v1487_v53, %v347_v57 }
 0x15e   :  { %v356_v63 = vsel %vm353_vm11, %v355_v61, %v351_v60 }
 0x15f   :  { %v359_v1 = vmul.f32 0.0, %v356_v63 }
 0x1a4   :  { %v362_v62 = vpop.permute.xlu2 %361 }
 0x1a5   :  { %v364_v0 = vmul.f32 %v362_v62, %v356_v63 }
 0x1a7   :  { %366 = vrot.lane.b32.xlu0 %v364_v0, %s1687_s12 }
 0x219   :  { %v367_v2 = vpop.permute.xlu0 %366 }
 0x21a   :  { %v369_v3 = vadd.f32 %v367_v2, %v359_v1 }
 0x21c   :  { %1488 = vtanh.f32 %v369_v3 }
 0x222   :  { %v1489_v4 = vpop.eup %1488 }
 0x223   :  { %372 = vrot.lane.b32.xlu1 %v1489_v4, %s1686_s4 }
 0x295   :  { %v373_v5 = vpop.permute.xlu1 %372 }
 0x296   :  { %v375_v6 = vmul.f32 %v373_v5, %v356_v63 }
 0x298   :  { %v378_v7 = vpack.c.bf16 %v375_v6, %v375_v6 }
 0x29a   :  { %380 = vrot.lane.b32.xlu2 %v378_v7, %s1687_s12 }
 0x2f4   :  { %v381_v8 = vpop.permute.xlu2 %380 }
 0x2f5   :  { %1412 = vmatmul.msk.bf16.vlgmr.msra.gmra.mxu3 %vm321_vm12, %v381_v8 }
 0x2f6   :  { %631 = vmatpush.bf16.msra.mxu3 %v1777_v25 }
 0x2fa   :  { %632 = vmatpush.bf16.msra.mxu3 %v1789_v30 }
 0x378   :  { %v394_v9 = vpop.f32.mrf.mxu3 }
 0x379   :  { %v398_v10 = vadd.f32 %v394_v9, %v161_v39 }
 0x37b   :  { %1490 = vtanh.f32 %v398_v10  ;;  %v1413_v13 = vmul.f32 -1.442695, %v398_v10 }
 0x37d   :  { %1492 = vpow2.f32 %v1413_v13 }
 0x380   :  { %v396_v11 = vpop.f32.mrf.mxu3 }
 0x381   :  { %v1491_v12 = vpop.eup %1490 }
 0x382   :  { %421 = vrot.lane.b32.xlu0 %v1491_v12, %s1686_s4 }
 0x383   :  { %v1493_v14 = vpop.eup %1492 }
 0x384   :  { %v402_v15 = vadd.f32 1.0, %v1493_v14 }
 0x386   :  { %1494 = vrcp.f32 %v402_v15  ;;  %v414_v21 = vand.u32 2147483648, %v402_v15  ;;  %vm408_vm14 = vweird.f32 %v402_v15  ;;  %v412_v22 = vand.u32 2147483647, %v402_v15 }
 0x388   :  { %v415_v24 = vor.u32 1.1754944e-38, %v414_v21  ;;  %vm413_vm0 = vcmp.eq.f32.partialorder %v412_v22, 8.507059e+37 }
 0x38c   :  { %v1495_v16 = vpop.eup %1494 }
 0x38d   :  { %v404_v17 = vmul.f32 %v1495_v16, %v402_v15  ;;  %vm409_vm13 = vweird.f32 %v1495_v16 }
 0x38e   :  { %vm410_vm15 = vmor %vm408_vm14, %vm409_vm13 }
 0x38f   :  { %v405_v18 = vsub.f32 1.0, %v404_v17 }
 0x391   :  { %v406_v19 = vmul.f32 %v1495_v16, %v405_v18 }
 0x393   :  { %v407_v20 = vadd.f32 %v1495_v16, %v406_v19 }
 0x395   :  { %v411_v23 = vsel %vm410_vm15, %v1495_v16, %v407_v20 }
 0x396   :  { %v416_v28 = vsel %vm413_vm0, %v415_v24, %v411_v23 }
 0x397   :  { %v419_v32 = vmul.f32 %v416_v28, %v369_v3 }
 0x3f4   :  { %v422_v26 = vpop.permute.xlu0 %421 }
 0x3f5   :  { %v424_v31 = vmul.f32 %v422_v26, %v416_v28 }
 0x3f7   :  { %426 = vrot.lane.b32.xlu1 %v424_v31, %s1687_s12 }
 0x469   :  { %v427_v33 = vpop.permute.xlu1 %426 }
 0x46a   :  { %v429_v34 = vadd.f32 %v427_v33, %v419_v32 }
 0x46c   :  { %1496 = vtanh.f32 %v429_v34 }
 0x472   :  { %v1497_v35 = vpop.eup %1496 }
 0x473   :  { %432 = vrot.lane.b32.xlu2 %v1497_v35, %s1686_s4 }
 0x4cd   :  { %v433_v36 = vpop.permute.xlu2 %432 }
 0x4ce   :  { %v435_v37 = vmul.f32 %v433_v36, %v416_v28 }
 0x4d0   :  { %v438_v38 = vpack.c.bf16 %v435_v37, %v435_v37 }
 0x4d2   :  { %440 = vrot.lane.b32.xlu0 %v438_v38, %s1687_s12 }
 0x544   :  { %v441_v39 = vpop.permute.xlu0 %440 }
 0x545   :  { %1414 = vmatmul.msk.bf16.vlgmr.msra.gmra.mxu2 %vm321_vm12, %v441_v39 }
 0x546   :  { %691 = vmatpush.bf16.msra.mxu2 %v1777_v25 }
 0x54a   :  { %692 = vmatpush.bf16.msra.mxu2 %v1789_v30 }
 0x5c8   :  { %v454_v46 = vpop.f32.mrf.mxu2 }
 0x5c9   :  { %v458_v47 = vadd.f32 %v454_v46, %v1813_v40 }
 0x5cb   :  { %1498 = vtanh.f32 %v458_v47  ;;  %v1415_v50 = vmul.f32 -1.442695, %v458_v47 }
 0x5cd   :  { %1500 = vpow2.f32 %v1415_v50 }
 0x5d0   :  { %v456_v48 = vpop.f32.mrf.mxu2 }
 0x5d1   :  { %v1499_v49 = vpop.eup %1498 }
 0x5d2   :  { %481 = vrot.lane.b32.xlu1 %v1499_v49, %s1686_s4 }
 0x5d3   :  { %v1501_v51 = vpop.eup %1500 }
 0x5d4   :  { %v462_v52 = vadd.f32 1.0, %v1501_v51 }
 0x5d6   :  { %1502 = vrcp.f32 %v462_v52  ;;  %v474_v58 = vand.u32 2147483648, %v462_v52  ;;  %vm468_vm2 = vweird.f32 %v462_v52  ;;  %v472_v59 = vand.u32 2147483647, %v462_v52 }
 0x5d8   :  { %v475_v60 = vor.u32 1.1754944e-38, %v474_v58  ;;  %vm473_vm4 = vcmp.eq.f32.partialorder %v472_v59, 8.507059e+37 }
 0x5dc   :  { %v1503_v53 = vpop.eup %1502 }
 0x5dd   :  { %v464_v54 = vmul.f32 %v1503_v53, %v462_v52  ;;  %vm469_vm1 = vweird.f32 %v1503_v53 }
 0x5de   :  { %vm470_vm3 = vmor %vm468_vm2, %vm469_vm1 }
 0x5df   :  { %v465_v55 = vsub.f32 1.0, %v464_v54 }
 0x5e1   :  { %v466_v56 = vmul.f32 %v1503_v53, %v465_v55 }
 0x5e3   :  { %v467_v57 = vadd.f32 %v1503_v53, %v466_v56 }
 0x5e5   :  { %v471_v40 = vsel %vm470_vm3, %v1503_v53, %v467_v57 }
 0x5e6   :  { %v476_v62 = vsel %vm473_vm4, %v475_v60, %v471_v40 }
 0x5e7   :  { %v479_v0 = vmul.f32 %v476_v62, %v429_v34 }
 0x644   :  { %v482_v61 = vpop.permute.xlu1 %481 }
 0x645   :  { %v484_v63 = vmul.f32 %v482_v61, %v476_v62 }
 0x647   :  { %486 = vrot.lane.b32.xlu2 %v484_v63, %s1687_s12 }
 0x6a1   :  { %v487_v1 = vpop.permute.xlu2 %486 }
 0x6a2   :  { %v489_v2 = vadd.f32 %v487_v1, %v479_v0 }
 0x6a4   :  { %1504 = vtanh.f32 %v489_v2 }
 0x6aa   :  { %v1505_v3 = vpop.eup %1504 }
 0x6ab   :  { %492 = vrot.lane.b32.xlu0 %v1505_v3, %s1686_s4 }
 0x71d   :  { %v493_v4 = vpop.permute.xlu0 %492 }
 0x71e   :  { %v495_v5 = vmul.f32 %v493_v4, %v476_v62 }
 0x720   :  { %v498_v6 = vpack.c.bf16 %v495_v5, %v495_v5 }
 0x722   :  { %500 = vrot.lane.b32.xlu1 %v498_v6, %s1687_s12 }
 0x794   :  { %v501_v7 = vpop.permute.xlu1 %500 }
 0x795   :  { %1416 = vmatmul.msk.bf16.vlgmr.msrb.gmra.mxu3 %vm321_vm12, %v501_v7 }
 0x796   :  { %751 = vmatpush.bf16.msrb.mxu3 %v1777_v25 }
 0x79a   :  { %752 = vmatpush.bf16.msrb.mxu3 %v1789_v30 }
 0x818   :  { %v514_v8 = vpop.f32.mrf.mxu3 }
 0x819   :  { %v518_v9 = vadd.f32 %v514_v8, %v1815_v41 }
 0x81b   :  { %1506 = vtanh.f32 %v518_v9  ;;  %v1417_v12 = vmul.f32 -1.442695, %v518_v9 }
 0x81d   :  { %1508 = vpow2.f32 %v1417_v12 }
 0x820   :  { %v516_v10 = vpop.f32.mrf.mxu3 }
 0x821   :  { %v1507_v11 = vpop.eup %1506 }
 0x822   :  { %541 = vrot.lane.b32.xlu2 %v1507_v11, %s1686_s4 }
 0x823   :  { %v1509_v13 = vpop.eup %1508 }
 0x824   :  { %v522_v14 = vadd.f32 1.0, %v1509_v13 }
 0x826   :  { %1510 = vrcp.f32 %v522_v14  ;;  %v534_v30 = vand.u32 2147483648, %v522_v14  ;;  %vm528_vm6 = vweird.f32 %v522_v14  ;;  %v532_v19 = vand.u32 2147483647, %v522_v14 }
 0x828   :  { %v535_v20 = vor.u32 1.1754944e-38, %v534_v30  ;;  %vm533_vm8 = vcmp.eq.f32.partialorder %v532_v19, 8.507059e+37 }
 0x82c   :  { %v1511_v15 = vpop.eup %1510 }
 0x82d   :  { %v524_v16 = vmul.f32 %v1511_v15, %v522_v14  ;;  %vm529_vm5 = vweird.f32 %v1511_v15 }
 0x82e   :  { %vm530_vm7 = vmor %vm528_vm6, %vm529_vm5 }
 0x82f   :  { %v525_v17 = vsub.f32 1.0, %v524_v16 }
 0x831   :  { %v526_v18 = vmul.f32 %v1511_v15, %v525_v17 }
 0x833   :  { %v527_v25 = vadd.f32 %v1511_v15, %v526_v18 }
 0x835   :  { %v531_v41 = vsel %vm530_vm7, %v1511_v15, %v527_v25 }
 0x836   :  { %v536_v22 = vsel %vm533_vm8, %v535_v20, %v531_v41 }
 0x837   :  { %v539_v24 = vmul.f32 %v536_v22, %v489_v2 }
 0x87c   :  { %v542_v21 = vpop.permute.xlu2 %541 }
 0x87d   :  { %v544_v23 = vmul.f32 %v542_v21, %v536_v22 }
 0x87f   :  { %546 = vrot.lane.b32.xlu0 %v544_v23, %s1687_s12 }
 0x8f1   :  { %v547_v26 = vpop.permute.xlu0 %546 }
 0x8f2   :  { %v549_v28 = vadd.f32 %v547_v26, %v539_v24 }
 0x8f4   :  { %1512 = vtanh.f32 %v549_v28 }
 0x8fa   :  { %v1513_v31 = vpop.eup %1512 }
 0x8fb   :  { %552 = vrot.lane.b32.xlu1 %v1513_v31, %s1686_s4 }
 0x96d   :  { %v553_v32 = vpop.permute.xlu1 %552 }
 0x96e   :  { %v555_v33 = vmul.f32 %v553_v32, %v536_v22 }
 0x970   :  { %v558_v34 = vpack.c.bf16 %v555_v33, %v555_v33 }
 0x972   :  { %560 = vrot.lane.b32.xlu2 %v558_v34, %s1687_s12 }
 0x9cc   :  { %v561_v35 = vpop.permute.xlu2 %560 }
 0x9cd   :  { %1418 = vmatmul.msk.bf16.vlgmr.msrb.gmra.mxu2 %vm321_vm12, %v561_v35 }
 0xa50   :  { %v574_v36 = vpop.f32.mrf.mxu2 }
 0xa51   :  { %v578_v37 = vadd.f32 %v574_v36, %v1817_v42 }
 0xa53   :  { %1514 = vtanh.f32 %v578_v37  ;;  %v1419_v46 = vmul.f32 -1.442695, %v578_v37 }
 0xa55   :  { %1516 = vpow2.f32 %v1419_v46 }
 0xa58   :  { %v576_v38 = vpop.f32.mrf.mxu2 }
 0xa59   :  { %v1515_v39 = vpop.eup %1514 }
 0xa5a   :  { %601 = vrot.lane.b32.xlu0 %v1515_v39, %s1686_s4 }
 0xa5b   :  { %v1517_v47 = vpop.eup %1516 }
 0xa5c   :  { %v582_v48 = vadd.f32 1.0, %v1517_v47 }
 0xa5e   :  { %1518 = vrcp.f32 %v582_v48  ;;  %v594_v54 = vand.u32 2147483648, %v582_v48  ;;  %vm588_vm10 = vweird.f32 %v582_v48  ;;  %v592_v55 = vand.u32 2147483647, %v582_v48 }
 0xa60   :  { %v595_v56 = vor.u32 1.1754944e-38, %v594_v54  ;;  %vm593_vm13 = vcmp.eq.f32.partialorder %v592_v55, 8.507059e+37 }
 0xa64   :  { %v1519_v49 = vpop.eup %1518 }
 0xa65   :  { %v584_v50 = vmul.f32 %v1519_v49, %v582_v48  ;;  %vm589_vm9 = vweird.f32 %v1519_v49 }
 0xa66   :  { %vm590_vm11 = vmor %vm588_vm10, %vm589_vm9 }
 0xa67   :  { %v585_v51 = vsub.f32 1.0, %v584_v50 }
 0xa69   :  { %v586_v52 = vmul.f32 %v1519_v49, %v585_v51 }
 0xa6b   :  { %v587_v53 = vadd.f32 %v1519_v49, %v586_v52 }
 0xa6d   :  { %v591_v42 = vsel %vm590_vm11, %v1519_v49, %v587_v53 }
 0xa6e   :  { %v596_v58 = vsel %vm593_vm13, %v595_v56, %v591_v42 }
 0xa6f   :  { %v599_v40 = vmul.f32 %v596_v58, %v549_v28 }
 0xacc   :  { %v602_v57 = vpop.permute.xlu0 %601 }
 0xacd   :  { %v604_v59 = vmul.f32 %v602_v57, %v596_v58 }
 0xacf   :  { %606 = vrot.lane.b32.xlu1 %v604_v59, %s1687_s12 }
 0xb41   :  { %v607_v60 = vpop.permute.xlu1 %606 }
 0xb42   :  { %v609_v61 = vadd.f32 %v607_v60, %v599_v40 }
 0xb44   :  { %1520 = vtanh.f32 %v609_v61 }
 0xb4a   :  { %v1521_v62 = vpop.eup %1520 }
 0xb4b   :  { %612 = vrot.lane.b32.xlu2 %v1521_v62, %s1686_s4 }
 0xba5   :  { %v613_v63 = vpop.permute.xlu2 %612 }
 0xba6   :  { %v615_v0 = vmul.f32 %v613_v63, %v596_v58 }
 0xba8   :  { %v618_v1 = vpack.c.bf16 %v615_v0, %v615_v0 }
 0xbaa   :  { %620 = vrot.lane.b32.xlu0 %v618_v1, %s1687_s12 }
 0xc1c   :  { %v621_v2 = vpop.permute.xlu0 %620 }
 0xc1d   :  { %1420 = vmatmul.msk.bf16.vlgmr.msra.gmra.mxu3 %vm321_vm12, %v621_v2 }
 0xca0   :  { %v634_v3 = vpop.f32.mrf.mxu3 }
 0xca1   :  { %v638_v4 = vadd.f32 %v634_v3, %v1819_v43 }
 0xca3   :  { %1522 = vtanh.f32 %v638_v4  ;;  %v1421_v7 = vmul.f32 -1.442695, %v638_v4  ;;  %v254_v4 = vld [vmem:[#allocation8 + $0x78] sm:$0xff] }
 0xca4   :  { %255 = vmatpush.msra.mxu1 %v254_v4 }
 0xca5   :  { %1524 = vpow2.f32 %v1421_v7  ;;  %v252_v7 = vld [vmem:[#allocation8 + $0x68] sm:$0xff] }
 0xca8   :  { %v636_v5 = vpop.f32.mrf.mxu3 }
 0xca9   :  { %v1523_v6 = vpop.eup %1522  ;;  %v253_v5 = vld [vmem:[#allocation8 + $0x70] sm:$0xff] }
 0xcaa   :  { %661 = vrot.lane.b32.xlu1 %v1523_v6, %s1686_s4  ;;  %256 = vmatpush.msra.mxu1 %v253_v5 }
 0xcab   :  { %v1525_v8 = vpop.eup %1524 }
 0xcac   :  { %v642_v9 = vadd.f32 1.0, %v1525_v8  ;;  %v251_v8 = vld [vmem:[#allocation8 + $0x60] sm:$0xff]  ;;  %257 = vmatpush.msra.mxu1 %v252_v7 }
 0xcae   :  { %1526 = vrcp.f32 %v642_v9  ;;  %v654_v15 = vand.u32 2147483648, %v642_v9  ;;  %vm648_vm15 = vweird.f32 %v642_v9  ;;  %v652_v16 = vand.u32 2147483647, %v642_v9  ;;  %258 = vmatpush.msra.mxu1 %v251_v8 }
 0xcb0   :  { %v655_v17 = vor.u32 1.1754944e-38, %v654_v15  ;;  %vm653_vm1 = vcmp.eq.f32.partialorder %v652_v16, 8.507059e+37  ;;  %v246_v15 = vld [vmem:[#allocation8 + $0x38] sm:$0xff] }
 0xcb4   :  { %v1527_v10 = vpop.eup %1526 }
 0xcb5   :  { %v644_v11 = vmul.f32 %v1527_v10, %v642_v9  ;;  %vm649_vm14 = vweird.f32 %v1527_v10  ;;  %v250_v9 = vld [vmem:[#allocation8 + $0x58] sm:$0xff] }
 0xcb6   :  { %vm650_vm0 = vmor %vm648_vm15, %vm649_vm14  ;;  %259 = vmatpush.msra.mxu1 %v250_v9 }
 0xcb7   :  { %v645_v12 = vsub.f32 1.0, %v644_v11 }
 0xcb9   :  { %v646_v13 = vmul.f32 %v1527_v10, %v645_v12  ;;  %v248_v12 = vld [vmem:[#allocation8 + $0x48] sm:$0xff] }
 0xcbb   :  { %v647_v14 = vadd.f32 %v1527_v10, %v646_v13  ;;  %v247_v13 = vld [vmem:[#allocation8 + $0x40] sm:$0xff] }
 0xcbd   :  { %v651_v43 = vsel %vm650_vm0, %v1527_v10, %v647_v14  ;;  %v249_v10 = vld [vmem:[#allocation8 + $0x50] sm:$0xff] }
 0xcbe   :  { %v656_v25 = vsel %vm653_vm1, %v655_v17, %v651_v43  ;;  %260 = vmatpush.msra.mxu1 %v249_v10  ;;  %v245_v17 = vld [vmem:[#allocation8 + $0x30] sm:$0xff] }
 0xcbf   :  { %v659_v19 = vmul.f32 %v656_v25, %v609_v61 }
 0xcc0   :  { %261 = vmatpush.msra.mxu1 %v248_v12 }
 0xcc2   :  { %262 = vmatpush.msra.mxu1 %v247_v13 }
 0xcc4   :  { %263 = vmatpush.msra.mxu1 %v246_v15  ;;  %v192_v15 = vld [vmem:[%s2030_s2 + $0x10] sm:$0xff] }
 0xcc6   :  { %264 = vmatpush.msra.mxu1 %v245_v17 }
 0xd1c   :  { %v662_v18 = vpop.permute.xlu1 %661 }
 0xd1d   :  { %v664_v30 = vmul.f32 %v662_v18, %v656_v25 }
 0xd1f   :  { %666 = vrot.lane.b32.xlu2 %v664_v30, %s1687_s12 }
 0xd79   :  { %v667_v41 = vpop.permute.xlu2 %666 }
 0xd7a   :  { %v669_v20 = vadd.f32 %v667_v41, %v659_v19 }
 0xd7c   :  { %1528 = vtanh.f32 %v669_v20 }
 0xd82   :  { %v1529_v21 = vpop.eup %1528 }
 0xd83   :  { %672 = vrot.lane.b32.xlu0 %v1529_v21, %s1686_s4  ;;  %v190_v21 = vld [vmem:[%s2030_s2] sm:$0xff] }
 0xdf5   :  { %v673_v22 = vpop.permute.xlu0 %672 }
 0xdf6   :  { %v675_v23 = vmul.f32 %v673_v22, %v656_v25  ;;  %v244_v25 = vld [vmem:[#allocation8 + $0x28] sm:$0xff]  ;;  %v243_v22 = vld [vmem:[#allocation8 + $0x20] sm:$0xff] }
 0xdf7   :  { %265 = vmatpush.msra.mxu1 %v244_v25 }
 0xdf8   :  { %v678_v24 = vpack.c.bf16 %v675_v23, %v675_v23  ;;  %v242_v23 = vld [vmem:[#allocation8 + $0x18] sm:$0xff] }
 0xdf9   :  { %266 = vmatpush.msra.mxu1 %v243_v22 }
 0xdfa   :  { %680 = vrot.lane.b32.xlu1 %v678_v24, %s1687_s12  ;;  %v241_v24 = vld [vmem:[#allocation8 + $0x10] sm:$0xff] }
 0xdfb   :  { %267 = vmatpush.msra.mxu1 %v242_v23 }
 0xdfd   :  { %268 = vmatpush.msra.mxu1 %v241_v24 }
 0xe6c   :  { %v681_v26 = vpop.permute.xlu1 %680 }
 0xe6d   :  { %1422 = vmatmul.msk.bf16.vlgmr.msra.gmra.mxu2 %vm321_vm12, %v681_v26  ;;  %v240_v26 = vld [vmem:[#allocation8 + $0x8] sm:$0xff] }
 0xe6e   :  { %269 = vmatpush.msra.mxu1 %v240_v26 }
 0xef0   :  { %v694_v28 = vpop.f32.mrf.mxu2 }
 0xef1   :  { %v698_v31 = vadd.f32 %v694_v28, %v1821_v44  ;;  %v239_v28 = vld [vmem:[#allocation8] sm:$0xff] }
 0xef2   :  { %270 = vmatpush.msra.mxu1 %v239_v28 }
 0xef3   :  { %1530 = vtanh.f32 %v698_v31  ;;  %v1423_v34 = vmul.f32 -1.442695, %v698_v31 }
 0xef5   :  { %1532 = vpow2.f32 %v1423_v34 }
 0xef8   :  { %v696_v32 = vpop.f32.mrf.mxu2 }
 0xef9   :  { %v1531_v33 = vpop.eup %1530 }
 0xefa   :  { %721 = vrot.lane.b32.xlu2 %v1531_v33, %s1686_s4 }
 0xefb   :  { %v1533_v35 = vpop.eup %1532 }
 0xefc   :  { %v702_v36 = vadd.f32 1.0, %v1533_v35 }
 0xefe   :  { %1534 = vrcp.f32 %v702_v36  ;;  %v714_v48 = vand.u32 2147483648, %v702_v36  ;;  %vm708_vm3 = vweird.f32 %v702_v36  ;;  %v712_v49 = vand.u32 2147483647, %v702_v36 }
 0xf00   :  { %v715_v50 = vor.u32 1.1754944e-38, %v714_v48  ;;  %vm713_vm5 = vcmp.eq.f32.partialorder %v712_v49, 8.507059e+37 }
 0xf04   :  { %v1535_v37 = vpop.eup %1534 }
 0xf05   :  { %v704_v38 = vmul.f32 %v1535_v37, %v702_v36  ;;  %vm709_vm2 = vweird.f32 %v1535_v37 }
 0xf06   :  { %vm710_vm4 = vmor %vm708_vm3, %vm709_vm2 }
 0xf07   :  { %v705_v39 = vsub.f32 1.0, %v704_v38 }
 0xf09   :  { %v706_v46 = vmul.f32 %v1535_v37, %v705_v39  ;;  %v1463_v39 = vld [vmem:[%s2033_s5 + $0x8] sm:$0xff] }
 0xf0a   :  { %823 = vmatpush.bf16.msrb.mxu2 %v1463_v39  ;;  %889 = vmatpush.bf16.msra.mxu3 %v1463_v39 }
 0xf0b   :  { %v707_v47 = vadd.f32 %v1535_v37, %v706_v46  ;;  %v1462_v46 = vld [vmem:[%s2033_s5] sm:$0xff]  ;;  %955 = vmatpush.bf16.msrb.mxu1 %v1463_v39  ;;  %1153 = vmatpush.bf16.msra.mxu0 %v1463_v39 }
 0xf0d   :  { %v711_v44 = vsel %vm710_vm4, %v1535_v37, %v707_v47 }
 0xf0e   :  { %v716_v52 = vsel %vm713_vm5, %v715_v50, %v711_v44  ;;  %824 = vmatpush.bf16.msrb.mxu2 %v1462_v46  ;;  %890 = vmatpush.bf16.msra.mxu3 %v1462_v46 }
 0xf0f   :  { %v719_v54 = vmul.f32 %v716_v52, %v669_v20  ;;  %956 = vmatpush.bf16.msrb.mxu1 %v1462_v46  ;;  %1154 = vmatpush.bf16.msra.mxu0 %v1462_v46 }
 0xf12   :  { %1021 = vmatpush.bf16.msra.mxu2 %v1463_v39 }
 0xf16   :  { %1022 = vmatpush.bf16.msra.mxu2 %v1462_v46 }
 0xf54   :  { %v722_v51 = vpop.permute.xlu2 %721 }
 0xf55   :  { %v724_v53 = vmul.f32 %v722_v51, %v716_v52 }
 0xf57   :  { %726 = vrot.lane.b32.xlu0 %v724_v53, %s1687_s12 }
 0xfc9   :  { %v727_v55 = vpop.permute.xlu0 %726 }
 0xfca   :  { %v1868_v42 = vadd.f32 %v727_v55, %v719_v54 }
 0xfcc   :  { %1536 = vtanh.f32 %v1868_v42 }
 0xfd2   :  { %v1537_v56 = vpop.eup %1536 }
 0xfd3   :  { %732 = vrot.lane.b32.xlu1 %v1537_v56, %s1686_s4 }
0x1045   :  { %v733_v57 = vpop.permute.xlu1 %732 }
0x1046   :  { %v735_v58 = vmul.f32 %v733_v57, %v716_v52 }
0x1048   :  { %v738_v59 = vpack.c.bf16 %v735_v58, %v735_v58 }
0x104a   :  { %740 = vrot.lane.b32.xlu2 %v738_v59, %s1687_s12 }
0x10a4   :  { %v741_v40 = vpop.permute.xlu2 %740 }
0x10a5   :  { %1424 = vmatmul.msk.bf16.vlgmr.msrb.gmra.mxu3 %vm321_vm12, %v741_v40 }
0x10a6   :  { %1087 = vmatpush.bf16.msrb.mxu3 %v1463_v39 }
0x10aa   :  { %1088 = vmatpush.bf16.msrb.mxu3 %v1462_v46 }
0x1128   :  { %v754_v60 = vpop.f32.mrf.mxu3 }
0x1129   :  { %v758_v61 = vadd.f32 %v754_v60, %v1823_v45 }
0x112b   :  { %1538 = vtanh.f32 %v758_v61  ;;  %v1425_v0 = vmul.f32 -1.442695, %v758_v61 }
0x112d   :  { %1540 = vpow2.f32 %v1425_v0 }
0x1130   :  { %v756_v62 = vpop.f32.mrf.mxu3 }
0x1131   :  { %v1539_v63 = vpop.eup %1538 }
0x1132   :  { %781 = vrot.lane.b32.xlu0 %v1539_v63, %s1686_s4 }
0x1133   :  { %v1541_v1 = vpop.eup %1540 }
0x1134   :  { %v762_v2 = vadd.f32 1.0, %v1541_v1  ;;  %v191_v1 = vld [vmem:[%s2030_s2 + $0x8] sm:$0xff] }
0x1136   :  { %1542 = vrcp.f32 %v762_v2  ;;  %v774_v16 = vand.u32 2147483648, %v762_v2  ;;  %vm768_vm7 = vweird.f32 %v762_v2  ;;  %v772_v43 = vand.u32 2147483647, %v762_v2 }
0x1138   :  { %v775_v30 = vor.u32 1.1754944e-38, %v774_v16  ;;  %vm773_vm9 = vcmp.eq.f32.partialorder %v772_v43, 8.507059e+37  ;;  %v195_v16 = vld [vmem:[%s2030_s2 + $0x28] sm:$0xff] }
0x113c   :  { %v1543_v3 = vpop.eup %1542 }
0x113d   :  { %v764_v6 = vmul.f32 %v1543_v3, %v762_v2  ;;  %vm769_vm6 = vweird.f32 %v1543_v3 }
0x113e   :  { %vm770_vm8 = vmor %vm768_vm7, %vm769_vm6 }
0x113f   :  { %v765_v45 = vsub.f32 1.0, %v764_v6 }
0x1141   :  { %v766_v11 = vmul.f32 %v1543_v3, %v765_v45 }
0x1143   :  { %v767_v14 = vadd.f32 %v1543_v3, %v766_v11 }
0x1145   :  { %v771_v18 = vsel %vm770_vm8, %v1543_v3, %v767_v14 }
0x1146   :  { %v776_v41 = vsel %vm773_vm9, %v775_v30, %v771_v18 }
0x1147   :  { %v779_v31 = vmul.f32 %v776_v41, %v1868_v42 }
0x11a4   :  { %v782_v19 = vpop.permute.xlu0 %781 }
0x11a5   :  { %v784_v20 = vmul.f32 %v782_v19, %v776_v41 }
0x11a7   :  { %786 = vrot.lane.b32.xlu1 %v784_v20, %s1687_s12 }
0x11af   :  { %198 = vperm.xlu1 %1479, %v190_v21  }
0x1219   :  { %v787_v32 = vpop.permute.xlu1 %786 }
0x121a   :  { %v789_v33 = vadd.f32 %v787_v32, %v779_v31 }
0x121c   :  { %1544 = vtanh.f32 %v789_v33 }
0x1221   :  { %v199_v34 = vpop.permute.xlu1 %198 }
0x1222   :  { %v1545_v35 = vpop.eup %1544  ;;  %vm218_vm10 = vcmp.eq.s32.totalorder %v199_v34, %v1782_v27  ;;  %v196_v34 = vld [vmem:[%s2030_s2 + $0x30] sm:$0xff] }
0x1223   :  { %1396 = vmatmul.msk.f32.vlgmr.msra.gmra.mxu1 %vm218_vm10, %v1685_v29  ;;  %792 = vrot.lane.b32.xlu2 %v1545_v35, %s1686_s4 }
0x1224   :  { %1219 = vmatpush.bf16.msra.mxu1 %v1463_v39 }
0x1228   :  { %1220 = vmatpush.bf16.msra.mxu1 %v1462_v46  ;;  %v194_v46 = vld [vmem:[%s2030_s2 + $0x20] sm:$0xff] }
0x127d   :  { %v793_v36 = vpop.permute.xlu2 %792 }
0x127e   :  { %v795_v37 = vmul.f32 %v793_v36, %v776_v41 }
0x1280   :  { %v798_v38 = vpack.c.bf16 %v795_v37, %v795_v37 }
0x1282   :  { %800 = vrot.lane.b32.xlu0 %v798_v38, %s1687_s12 }
0x12a0   :  { %v272_v48 = vpop.f32.mrf.mxu1 }
0x12f4   :  { %v801_v47 = vpop.permute.xlu0 %800 }
0x12f5   :  { %1434 = vmatmul.msk.bf16.vlgmr.msrb.gmra.mxu2 %vm321_vm12, %v801_v47 }
0x1378   :  { %v826_v49 = vpop.f32.mrf.mxu2 }
0x1379   :  { %v830_v44 = vadd.f32 %v826_v49, %v272_v48 }
0x137b   :  { %1546 = vtanh.f32 %v830_v44  ;;  %v1435_v52 = vmul.f32 -1.442695, %v830_v44 }
0x137d   :  { %1548 = vpow2.f32 %v1435_v52 }
0x1380   :  { %v828_v50 = vpop.f32.mrf.mxu2 }
0x1381   :  { %v1547_v51 = vpop.eup %1546 }
0x1382   :  { %853 = vrot.lane.b32.xlu2 %v1547_v51, %s1686_s4 }
0x1383   :  { %v1549_v53 = vpop.eup %1548 }
0x1384   :  { %v834_v54 = vadd.f32 1.0, %v1549_v53 }
0x1386   :  { %1550 = vrcp.f32 %v834_v54  ;;  %v846_v59 = vand.u32 2147483648, %v834_v54  ;;  %vm840_vm13 = vweird.f32 %v834_v54  ;;  %v844_v40 = vand.u32 2147483647, %v834_v54 }
0x1388   :  { %v847_v61 = vor.u32 1.1754944e-38, %v846_v59  ;;  %vm845_vm15 = vcmp.eq.f32.partialorder %v844_v40, 8.507059e+37 }
0x138c   :  { %v1551_v55 = vpop.eup %1550 }
0x138d   :  { %v836_v42 = vmul.f32 %v1551_v55, %v834_v54  ;;  %vm841_vm11 = vweird.f32 %v1551_v55 }
0x138e   :  { %vm842_vm14 = vmor %vm840_vm13, %vm841_vm11 }
0x138f   :  { %v837_v56 = vsub.f32 1.0, %v836_v42 }
0x1391   :  { %v838_v57 = vmul.f32 %v1551_v55, %v837_v56 }
0x1393   :  { %v839_v58 = vadd.f32 %v1551_v55, %v838_v57 }
0x1395   :  { %v843_v60 = vsel %vm842_vm14, %v1551_v55, %v839_v58 }
0x1396   :  { %v848_v63 = vsel %vm845_vm15, %v847_v61, %v843_v60 }
0x1397   :  { %v851_v2 = vmul.f32 %v848_v63, %v789_v33  ;;  %v193_v33 = vld [vmem:[%s2030_s2 + $0x18] sm:$0xff] }
0x13dc   :  { %v854_v62 = vpop.permute.xlu2 %853 }
0x13dd   :  { %v856_v0 = vmul.f32 %v854_v62, %v848_v63 }
0x13df   :  { %858 = vrot.lane.b32.xlu0 %v856_v0, %s1687_s12 }
0x13e7   :  { %201 = vperm.xlu0 %1478, %v191_v1  }
0x1451   :  { %v859_v3 = vpop.permute.xlu0 %858 }
0x1452   :  { %v861_v4 = vadd.f32 %v859_v3, %v851_v2 }
0x1454   :  { %1552 = vtanh.f32 %v861_v4 }
0x1459   :  { %v202_v5 = vpop.permute.xlu0 %201 }
0x145a   :  { %v1553_v6 = vpop.eup %1552  ;;  %vm219_vm0 = vcmp.eq.s32.totalorder %v202_v5, %v1782_v27 }
0x145b   :  { %1397 = vmatmul.msk.f32.gmra.mxu1 %vm219_vm0, %v1685_v29  ;;  %864 = vrot.lane.b32.xlu1 %v1553_v6, %s1686_s4 }
0x14cd   :  { %v865_v7 = vpop.permute.xlu1 %864 }
0x14ce   :  { %v1900_v8 = vmul.f32 %v865_v7, %v848_v63 }
0x14d0   :  { %v876_v45 = vpack.c.bf16 %v1900_v8, %v1900_v8 }
0x14d2   :  { %878 = vrot.lane.b32.xlu2 %v876_v45, %s1687_s12 }
0x14d8   :  { %v275_v10 = vpop.f32.mrf.mxu1 }
0x152c   :  { %v879_v9 = vpop.permute.xlu2 %878 }
0x152d   :  { %1436 = vmatmul.msk.bf16.vlgmr.msra.gmra.mxu3 %vm321_vm12, %v879_v9 }
0x15b0   :  { %v892_v11 = vpop.f32.mrf.mxu3 }
0x15b1   :  { %v896_v12 = vadd.f32 %v892_v11, %v275_v10 }
0x15b3   :  { %1554 = vtanh.f32 %v896_v12  ;;  %v1437_v43 = vmul.f32 -1.442695, %v896_v12 }
0x15b5   :  { %1556 = vpow2.f32 %v1437_v43 }
0x15b8   :  { %v894_v13 = vpop.f32.mrf.mxu3 }
0x15b9   :  { %v1555_v14 = vpop.eup %1554 }
0x15ba   :  { %919 = vrot.lane.b32.xlu1 %v1555_v14, %s1686_s4 }
0x15bb   :  { %v1557_v17 = vpop.eup %1556 }
0x15bc   :  { %v900_v18 = vadd.f32 1.0, %v1557_v17 }
0x15be   :  { %1558 = vrcp.f32 %v900_v18  ;;  %v912_v21 = vand.u32 2147483648, %v900_v18  ;;  %vm906_vm2 = vweird.f32 %v900_v18  ;;  %v910_v22 = vand.u32 2147483647, %v900_v18 }
0x15c0   :  { %v913_v24 = vor.u32 1.1754944e-38, %v912_v21  ;;  %vm911_vm4 = vcmp.eq.f32.partialorder %v910_v22, 8.507059e+37 }
0x15c2   :  { %204 = vperm.xlu1 %1479, %v192_v15  }
0x15c4   :  { %v1559_v25 = vpop.eup %1558 }
0x15c5   :  { %v902_v30 = vmul.f32 %v1559_v25, %v900_v18  ;;  %vm907_vm1 = vweird.f32 %v1559_v25 }
0x15c6   :  { %vm908_vm3 = vmor %vm906_vm2, %vm907_vm1 }
0x15c7   :  { %v903_v19 = vsub.f32 1.0, %v902_v30 }
0x15c9   :  { %v904_v41 = vmul.f32 %v1559_v25, %v903_v19 }
0x15ca   :  { %213 = vperm.xlu1 %1479, %v195_v16  }
0x15cb   :  { %v905_v20 = vadd.f32 %v1559_v25, %v904_v41 }
0x15cd   :  { %v909_v23 = vsel %vm908_vm3, %v1559_v25, %v905_v20 }
0x15ce   :  { %v914_v28 = vsel %vm911_vm4, %v913_v24, %v909_v23 }
0x15cf   :  { %v917_v35 = vmul.f32 %v914_v28, %v861_v4 }
0x162c   :  { %v920_v26 = vpop.permute.xlu1 %919 }
0x162d   :  { %v922_v31 = vmul.f32 %v920_v26, %v914_v28 }
0x162f   :  { %924 = vrot.lane.b32.xlu2 %v922_v31, %s1687_s12 }
0x1634   :  { %v205_v32 = vpop.permute.xlu1 %204 }
0x1635   :  { %vm220_vm5 = vcmp.eq.s32.totalorder %v205_v32, %v1782_v27 }
0x1636   :  { %1398 = vmatmul.msk.f32.gmra.mxu1 %vm220_vm5, %v1685_v29 }
0x1637   :  { %207 = vperm.xlu2 %1480, %v193_v33  }
0x163c   :  { %v214_v50 = vpop.permute.xlu1 %213 }
0x163d   :  { %vm223_vm8 = vcmp.eq.s32.totalorder %v214_v50, %v1782_v27 }
0x163f   :  { %216 = vperm.xlu2 %1480, %v196_v34  }
0x1689   :  { %v925_v36 = vpop.permute.xlu2 %924 }
0x168a   :  { %v927_v37 = vadd.f32 %v925_v36, %v917_v35 }
0x168c   :  { %1560 = vtanh.f32 %v927_v37 }
0x1691   :  { %v208_v38 = vpop.permute.xlu2 %207 }
0x1692   :  { %v1561_v39 = vpop.eup %1560  ;;  %vm221_vm6 = vcmp.eq.s32.totalorder %v208_v38, %v1782_v27 }
0x1693   :  { %1399 = vmatmul.msk.f32.gmra.mxu1 %vm221_vm6, %v1685_v29  ;;  %930 = vrot.lane.b32.xlu0 %v1561_v39, %s1686_s4 }
0x1699   :  { %v217_v51 = vpop.permute.xlu2 %216 }
0x169a   :  { %vm224_vm9 = vcmp.eq.s32.totalorder %v217_v51, %v1782_v27 }
0x169b   :  { %210 = vperm.xlu0 %1478, %v194_v46  }
0x16b3   :  { %v278_v53 = vpop.f32.mrf.mxu1 }
0x1705   :  { %v931_v47 = vpop.permute.xlu0 %930 }
0x1706   :  { %v1928_v48 = vmul.f32 %v931_v47, %v914_v28 }
0x1708   :  { %v942_v49 = vpack.c.bf16 %v1928_v48, %v1928_v48 }
0x170a   :  { %944 = vrot.lane.b32.xlu0 %v942_v49, %s1687_s12 }
0x170d   :  { %v211_v44 = vpop.permute.xlu0 %210 }
0x170e   :  { %vm222_vm7 = vcmp.eq.s32.totalorder %v211_v44, %v1782_v27 }
0x170f   :  { %1400 = vmatmul.msk.f32.gmra.mxu1 %vm222_vm7, %v1685_v29 }
0x1710   :  { %v281_v54 = vpop.f32.mrf.mxu1 }
0x1717   :  { %1401 = vmatmul.msk.f32.gmra.mxu1 %vm223_vm8, %v1685_v29 }
0x171f   :  { %1402 = vmatmul.msk.f32.gmra.mxu1 %vm224_vm9, %v1685_v29 }
0x177c   :  { %v945_v52 = vpop.permute.xlu0 %944 }
0x177d   :  { %1438 = vmatmul.msk.bf16.vlgmr.msrb.gmra.mxu1 %vm321_vm12, %v945_v52 }
0x178c   :  { %v1940_v55 = vpop.f32.mrf.mxu1 }
0x1794   :  { %v1942_v42 = vpop.f32.mrf.mxu1 }
0x179c   :  { %v1944_v56 = vpop.f32.mrf.mxu1 }
0x17fa   :  { %v958_v57 = vpop.f32.mrf.mxu1 }
0x17fb   :  { %v962_v58 = vadd.f32 %v958_v57, %v278_v53 }
0x17fd   :  { %1562 = vtanh.f32 %v962_v58  ;;  %v1439_v27 = vmul.f32 -1.442695, %v962_v58 }
0x17ff   :  { %1564 = vpow2.f32 %v1439_v27 }
0x1802   :  { %v960_v59 = vpop.f32.mrf.mxu1 }
0x1803   :  { %v1563_v40 = vpop.eup %1562 }
0x1804   :  { %985 = vrot.lane.b32.xlu1 %v1563_v40, %s1686_s4 }
0x1805   :  { %v1565_v29 = vpop.eup %1564 }
0x1806   :  { %v966_v60 = vadd.f32 1.0, %v1565_v29 }
0x1808   :  { %1566 = vrcp.f32 %v966_v60  ;;  %v978_v2 = vand.u32 2147483648, %v966_v60  ;;  %vm972_vm11 = vweird.f32 %v966_v60  ;;  %v976_v3 = vand.u32 2147483647, %v966_v60 }
0x180a   :  { %v979_v5 = vor.u32 1.1754944e-38, %v978_v2  ;;  %vm977_vm14 = vcmp.eq.f32.partialorder %v976_v3, 8.507059e+37 }
0x180e   :  { %v1567_v61 = vpop.eup %1566 }
0x180f   :  { %v968_v62 = vmul.f32 %v1567_v61, %v966_v60  ;;  %vm973_vm10 = vweird.f32 %v1567_v61 }
0x1810   :  { %vm974_vm13 = vmor %vm972_vm11, %vm973_vm10 }
0x1811   :  { %v969_v63 = vsub.f32 1.0, %v968_v62 }
0x1813   :  { %v970_v0 = vmul.f32 %v1567_v61, %v969_v63 }
0x1815   :  { %v971_v1 = vadd.f32 %v1567_v61, %v970_v0 }
0x1817   :  { %v975_v4 = vsel %vm974_vm13, %v1567_v61, %v971_v1 }
0x1818   :  { %v980_v7 = vsel %vm977_vm14, %v979_v5, %v975_v4 }
0x1819   :  { %v983_v9 = vmul.f32 %v980_v7, %v927_v37 }
0x1876   :  { %v986_v6 = vpop.permute.xlu1 %985 }
0x1877   :  { %v988_v45 = vmul.f32 %v986_v6, %v980_v7 }
0x1879   :  { %990 = vrot.lane.b32.xlu2 %v988_v45, %s1687_s12 }
0x18d3   :  { %v991_v10 = vpop.permute.xlu2 %990 }
0x18d4   :  { %v993_v11 = vadd.f32 %v991_v10, %v983_v9 }
0x18d6   :  { %1568 = vtanh.f32 %v993_v11 }
0x18dc   :  { %v1569_v12 = vpop.eup %1568 }
0x18dd   :  { %996 = vrot.lane.b32.xlu0 %v1569_v12, %s1686_s4 }
0x194f   :  { %v997_v13 = vpop.permute.xlu0 %996 }
0x1950   :  { %v1949_v14 = vmul.f32 %v997_v13, %v980_v7 }
0x1952   :  { %v1008_v15 = vpack.c.bf16 %v1949_v14, %v1949_v14 }
0x1954   :  { %1010 = vrot.lane.b32.xlu1 %v1008_v15, %s1687_s12 }
0x19c6   :  { %v1011_v16 = vpop.permute.xlu1 %1010 }
0x19c7   :  { %1440 = vmatmul.msk.bf16.vlgmr.msra.gmra.mxu2 %vm321_vm12, %v1011_v16 }
0x1a4a   :  { %v1024_v43 = vpop.f32.mrf.mxu2 }
0x1a4b   :  { %v1028_v17 = vadd.f32 %v1024_v43, %v281_v54 }
0x1a4d   :  { %1570 = vtanh.f32 %v1028_v17  ;;  %v1441_v30 = vmul.f32 -1.442695, %v1028_v17 }
0x1a4f   :  { %1572 = vpow2.f32 %v1441_v30 }
0x1a52   :  { %v1026_v18 = vpop.f32.mrf.mxu2 }
0x1a53   :  { %v1571_v25 = vpop.eup %1570 }
0x1a54   :  { %1051 = vrot.lane.b32.xlu2 %v1571_v25, %s1686_s4 }
0x1a55   :  { %v1573_v19 = vpop.eup %1572 }
0x1a56   :  { %v1032_v41 = vadd.f32 1.0, %v1573_v19 }
0x1a58   :  { %1574 = vrcp.f32 %v1032_v41  ;;  %v1044_v26 = vand.u32 2147483648, %v1032_v41  ;;  %vm1038_vm0 = vweird.f32 %v1032_v41  ;;  %v1042_v28 = vand.u32 2147483647, %v1032_v41 }
0x1a5a   :  { %v1045_v32 = vor.u32 1.1754944e-38, %v1044_v26  ;;  %vm1043_vm2 = vcmp.eq.f32.partialorder %v1042_v28, 8.507059e+37 }
0x1a5e   :  { %v1575_v20 = vpop.eup %1574 }
0x1a5f   :  { %v1034_v21 = vmul.f32 %v1575_v20, %v1032_v41  ;;  %vm1039_vm15 = vweird.f32 %v1575_v20 }
0x1a60   :  { %vm1040_vm1 = vmor %vm1038_vm0, %vm1039_vm15 }
0x1a61   :  { %v1035_v22 = vsub.f32 1.0, %v1034_v21 }
0x1a63   :  { %v1036_v23 = vmul.f32 %v1575_v20, %v1035_v22 }
0x1a65   :  { %v1037_v24 = vadd.f32 %v1575_v20, %v1036_v23 }
0x1a67   :  { %v1041_v31 = vsel %vm1040_vm1, %v1575_v20, %v1037_v24 }
0x1a68   :  { %v1046_v34 = vsel %vm1043_vm2, %v1045_v32, %v1041_v31 }
0x1a69   :  { %v1049_v36 = vmul.f32 %v1046_v34, %v993_v11 }
0x1aae   :  { %v1052_v33 = vpop.permute.xlu2 %1051 }
0x1aaf   :  { %v1054_v35 = vmul.f32 %v1052_v33, %v1046_v34 }
0x1ab1   :  { %1056 = vrot.lane.b32.xlu0 %v1054_v35, %s1687_s12 }
0x1b23   :  { %v1057_v37 = vpop.permute.xlu0 %1056 }
0x1b24   :  { %v1059_v38 = vadd.f32 %v1057_v37, %v1049_v36 }
0x1b26   :  { %1576 = vtanh.f32 %v1059_v38 }
0x1b2c   :  { %v1577_v39 = vpop.eup %1576 }
0x1b2d   :  { %1062 = vrot.lane.b32.xlu1 %v1577_v39, %s1686_s4 }
0x1b9f   :  { %v1063_v46 = vpop.permute.xlu1 %1062 }
0x1ba0   :  { %v1958_v47 = vmul.f32 %v1063_v46, %v1046_v34 }
0x1ba2   :  { %v1074_v49 = vpack.c.bf16 %v1958_v47, %v1958_v47 }
0x1ba4   :  { %1076 = vrot.lane.b32.xlu2 %v1074_v49, %s1687_s12 }
0x1bfe   :  { %v1077_v44 = vpop.permute.xlu2 %1076 }
0x1bff   :  { %1442 = vmatmul.msk.bf16.vlgmr.msrb.gmra.mxu3 %vm321_vm12, %v1077_v44 }
0x1c82   :  { %v1090_v50 = vpop.f32.mrf.mxu3 }
0x1c83   :  { %v1094_v51 = vadd.f32 %v1090_v50, %v1940_v55 }
0x1c85   :  { %1578 = vtanh.f32 %v1094_v51  ;;  %v1443_v54 = vmul.f32 -1.442695, %v1094_v51 }
0x1c87   :  { %1580 = vpow2.f32 %v1443_v54 }
0x1c8a   :  { %v1092_v52 = vpop.f32.mrf.mxu3 }
0x1c8b   :  { %v1579_v53 = vpop.eup %1578  ;;  %v1688_v52 = vmov 0.0  }
0x1c8c   :  { %1117 = vrot.lane.b32.xlu0 %v1579_v53, %s1686_s4  ;;  %796 = vst.msk [vmem:[#allocation4] sm:$0xff] %vm321_vm12, %v1688_v52  ;;  %v1465_v53 = vld [vmem:[%s2034_s6 + $0x8] sm:$0xff] }
0x1c8d   :  { %v1581_v57 = vpop.eup %1580  ;;  %1352 = vst [vmem:[#allocation10] sm:$0xff] %v1688_v52  ;;  %1321 = vmatpush.bf16.msrb.mxu2 %v1465_v53  ;;  %1466 = vmatpush.bf16.msra.mxu3 %v1465_v53 }
0x1c8e   :  { %v1098_v58 = vadd.f32 1.0, %v1581_v57 }
0x1c90   :  { %1582 = vrcp.f32 %v1098_v58  ;;  %v1110_v61 = vand.u32 2147483648, %v1098_v58  ;;  %vm1104_vm4 = vweird.f32 %v1098_v58  ;;  %v1108_v62 = vand.u32 2147483647, %v1098_v58 }
0x1c92   :  { %v1111_v63 = vor.u32 1.1754944e-38, %v1110_v61  ;;  %vm1109_vm6 = vcmp.eq.f32.partialorder %v1108_v62, 8.507059e+37 }
0x1c96   :  { %v1583_v59 = vpop.eup %1582 }
0x1c97   :  { %v1100_v40 = vmul.f32 %v1583_v59, %v1098_v58  ;;  %vm1105_vm3 = vweird.f32 %v1583_v59 }
0x1c98   :  { %vm1106_vm5 = vmor %vm1104_vm4, %vm1105_vm3 }
0x1c99   :  { %v1101_v27 = vsub.f32 1.0, %v1100_v40 }
0x1c9b   :  { %v1102_v29 = vmul.f32 %v1583_v59, %v1101_v27 }
0x1c9d   :  { %v1103_v60 = vadd.f32 %v1583_v59, %v1102_v29 }
0x1c9f   :  { %v1107_v55 = vsel %vm1106_vm5, %v1583_v59, %v1103_v60 }
0x1ca0   :  { %v1112_v1 = vsel %vm1109_vm6, %v1111_v63, %v1107_v55  ;;  %v1270_v63 = vld [vmem:[#allocation4] sm:$0xff] }
0x1ca1   :  { %v1115_v3 = vmul.f32 %v1112_v1, %v1059_v38 }
0x1cfe   :  { %v1118_v0 = vpop.permute.xlu0 %1117 }
0x1cff   :  { %v1120_v2 = vmul.f32 %v1118_v0, %v1112_v1 }
0x1d01   :  { %1122 = vrot.lane.b32.xlu1 %v1120_v2, %s1687_s12 }
0x1d73   :  { %v1123_v4 = vpop.permute.xlu1 %1122 }
0x1d74   :  { %v1125_v5 = vadd.f32 %v1123_v4, %v1115_v3 }
0x1d76   :  { %1584 = vtanh.f32 %v1125_v5 }
0x1d7c   :  { %v1585_v6 = vpop.eup %1584 }
0x1d7d   :  { %1128 = vrot.lane.b32.xlu2 %v1585_v6, %s1686_s4 }
0x1dd7   :  { %v1129_v7 = vpop.permute.xlu2 %1128 }
0x1dd8   :  { %v1968_v45 = vmul.f32 %v1129_v7, %v1112_v1 }
0x1dda   :  { %v1140_v9 = vpack.c.bf16 %v1968_v45, %v1968_v45 }
0x1ddc   :  { %1142 = vrot.lane.b32.xlu0 %v1140_v9, %s1687_s12 }
0x1e4e   :  { %v1143_v10 = vpop.permute.xlu0 %1142 }
0x1e4f   :  { %1444 = vmatmul.msk.bf16.vlgmr.msra.gmra.mxu0 %vm321_vm12, %v1143_v10 }
0x1ecc   :  { %v1156_v11 = vpop.f32.mrf.mxu0 }
0x1ecd   :  { %v1160_v12 = vadd.f32 %v1156_v11, %v1942_v42 }
0x1ecf   :  { %1586 = vtanh.f32 %v1160_v12  ;;  %v1445_v16 = vmul.f32 -1.442695, %v1160_v12  ;;  %v1481_v12 = vld [vmem:[%s2035_s7] ss:$0 sm:$0xff]  ;;  %s1689_s7 = smov [#allocation10]  }
0x1ed0   :  { %s1357_s11 = sshll.u32 %s1689_s7, 4  ;;  %s1358_s11 = int_to_ptr.vmem [resolvable:$true] %s1357_s11 }
0x1ed1   :  { %1588 = vpow2.f32 %v1445_v16 }
0x1ed4   :  { %v1158_v13 = vpop.f32.mrf.mxu0 }
0x1ed5   :  { %v1587_v15 = vpop.eup %1586 }
0x1ed6   :  { %1183 = vrot.lane.b32.xlu1 %v1587_v15, %s1686_s4 }
0x1ed7   :  { %v1589_v43 = vpop.eup %1588 }
0x1ed8   :  { %v1164_v17 = vadd.f32 1.0, %v1589_v43 }
0x1eda   :  { %1590 = vrcp.f32 %v1164_v17  ;;  %v1176_v20 = vand.u32 2147483648, %v1164_v17  ;;  %vm1170_vm8 = vweird.f32 %v1164_v17  ;;  %v1174_v21 = vand.u32 2147483647, %v1164_v17 }
0x1edc   :  { %v1177_v22 = vor.u32 1.1754944e-38, %v1176_v20  ;;  %vm1175_vm10 = vcmp.eq.f32.partialorder %v1174_v21, 8.507059e+37 }
0x1ee0   :  { %v1591_v18 = vpop.eup %1590 }
0x1ee1   :  { %v1166_v25 = vmul.f32 %v1591_v18, %v1164_v17  ;;  %vm1171_vm7 = vweird.f32 %v1591_v18 }
0x1ee2   :  { %vm1172_vm9 = vmor %vm1170_vm8, %vm1171_vm7 }
0x1ee3   :  { %v1167_v30 = vsub.f32 1.0, %v1166_v25 }
0x1ee5   :  { %v1168_v19 = vmul.f32 %v1591_v18, %v1167_v30 }
0x1ee7   :  { %v1169_v41 = vadd.f32 %v1591_v18, %v1168_v19 }
0x1ee9   :  { %v1173_v42 = vsel %vm1172_vm9, %v1591_v18, %v1169_v41 }
0x1eea   :  { %v1178_v24 = vsel %vm1175_vm10, %v1177_v22, %v1173_v42 }
0x1eeb   :  { %v1181_v28 = vmul.f32 %v1178_v24, %v1125_v5 }
0x1f48   :  { %v1184_v23 = vpop.permute.xlu1 %1183 }
0x1f49   :  { %v1186_v26 = vmul.f32 %v1184_v23, %v1178_v24 }
0x1f4b   :  { %1188 = vrot.lane.b32.xlu2 %v1186_v26, %s1687_s12 }
0x1fa5   :  { %v1189_v31 = vpop.permute.xlu2 %1188 }
0x1fa6   :  { %v1191_v32 = vadd.f32 %v1189_v31, %v1181_v28 }
0x1fa8   :  { %1592 = vtanh.f32 %v1191_v32 }
0x1fae   :  { %v1593_v33 = vpop.eup %1592 }
0x1faf   :  { %1194 = vrot.lane.b32.xlu0 %v1593_v33, %s1686_s4 }
0x2021   :  { %v1195_v34 = vpop.permute.xlu0 %1194 }
0x2022   :  { %v1978_v35 = vmul.f32 %v1195_v34, %v1178_v24 }
0x2024   :  { %v1206_v36 = vpack.c.bf16 %v1978_v35, %v1978_v35 }
0x2026   :  { %1208 = vrot.lane.b32.xlu1 %v1206_v36, %s1687_s12 }
0x2098   :  { %v1209_v37 = vpop.permute.xlu1 %1208 }
0x2099   :  { %1446 = vmatmul.msk.bf16.vlgmr.msra.gmra.mxu1 %vm321_vm12, %v1209_v37 }
0x2116   :  { %v1222_v38 = vpop.f32.mrf.mxu1 }
0x2117   :  { %v1226_v39 = vadd.f32 %v1222_v38, %v1944_v56 }
0x2119   :  { %1594 = vtanh.f32 %v1226_v39  ;;  %v1447_v44 = vmul.f32 -1.442695, %v1226_v39 }
0x211b   :  { %1596 = vpow2.f32 %v1447_v44 }
0x211e   :  { %v1224_v46 = vpop.f32.mrf.mxu1 }
0x211f   :  { %v1595_v49 = vpop.eup %1594 }
0x2120   :  { %1249 = vrot.lane.b32.xlu2 %v1595_v49, %s1686_s4 }
0x2121   :  { %v1597_v50 = vpop.eup %1596 }
0x2122   :  { %v1230_v51 = vadd.f32 1.0, %v1597_v50 }
0x2124   :  { %1598 = vrcp.f32 %v1230_v51  ;;  %v1242_v59 = vand.u32 2147483648, %v1230_v51  ;;  %vm1236_vm13 = vweird.f32 %v1230_v51  ;;  %v1240_v40 = vand.u32 2147483647, %v1230_v51 }
0x2126   :  { %v1243_v29 = vor.u32 1.1754944e-38, %v1242_v59  ;;  %vm1241_vm15 = vcmp.eq.f32.partialorder %v1240_v40, 8.507059e+37 }
0x2128   :  { %869 = vrot.lane.b32.xlu2 %v1900_v8, %s1687_s12  ;;  %v1464_v8 = vld [vmem:[%s2034_s6] sm:$0xff] }
0x2129   :  { %1322 = vmatpush.bf16.msrb.mxu2 %v1464_v8  ;;  %1467 = vmatpush.bf16.msra.mxu3 %v1464_v8 }
0x212a   :  { %v1599_v56 = vpop.eup %1598 }
0x212b   :  { %vm1237_vm11 = vweird.f32 %v1599_v56 }
0x212c   :  { %vm1238_vm14 = vmor %vm1236_vm13, %vm1237_vm11 }
0x2130   :  { %935 = vrot.lane.b32.xlu2 %v1928_v48, %s1687_s12  ;;  %v1232_v48 = vmul.f32 %v1599_v56, %v1230_v51 }
0x2132   :  { %v1233_v54 = vsub.f32 1.0, %v1232_v48 }
0x2134   :  { %v1234_v57 = vmul.f32 %v1599_v56, %v1233_v54 }
0x2136   :  { %v1235_v58 = vadd.f32 %v1599_v56, %v1234_v57 }
0x2138   :  { %v1239_v27 = vsel %vm1238_vm14, %v1599_v56, %v1235_v58 }
0x2139   :  { %v1244_v61 = vsel %vm1241_vm15, %v1243_v29, %v1239_v27 }
0x213a   :  { %v1247_v3 = vmul.f32 %v1244_v61, %v1191_v32 }
0x217a   :  { %v1250_v60 = vpop.permute.xlu2 %1249 }
0x217b   :  { %v1252_v62 = vmul.f32 %v1250_v60, %v1244_v61 }
0x217d   :  { %1254 = vrot.lane.b32.xlu0 %v1252_v62, %s1687_s12 }
0x2182   :  { %v870_v55 = vpop.permute.xlu2 %869 }
0x2183   :  { %873 = vst.msk [vmem:[#allocation4 + $0x8] sm:$0xff] %vm321_vm12, %v870_v55 }
0x2185   :  { %1067 = vrot.lane.b32.xlu0 %v1958_v47, %s1687_s12 }
0x218a   :  { %v936_v0 = vpop.permute.xlu2 %935  ;;  %v1271_v1 = vld [vmem:[#allocation4 + $0x8] sm:$0xff] }
0x218b   :  { %939 = vst.msk [vmem:[#allocation4 + $0x10] sm:$0xff] %vm321_vm12, %v936_v0  ;;  %v1278_v2 = vpack.c.bf16 %v1271_v1, %v1270_v63 }
0x218d   :  { %1456 = vmatmul.msk.bf16.vlgmr.msrb.gmra.mxu2 %vm321_vm12, %v1278_v2  ;;  %1001 = vrot.lane.b32.xlu0 %v1949_v14, %s1687_s12 }
0x2192   :  { %v1272_v9 = vld [vmem:[#allocation4 + $0x10] sm:$0xff] }
0x21ef   :  { %v1255_v4 = vpop.permute.xlu0 %1254 }
0x21f0   :  { %v1257_v5 = vadd.f32 %v1255_v4, %v1247_v3 }
0x21f2   :  { %1600 = vtanh.f32 %v1257_v5 }
0x21f7   :  { %v1068_v6 = vpop.permute.xlu0 %1067 }
0x21f8   :  { %v1601_v7 = vpop.eup %1600  ;;  %1071 = vst.msk [vmem:[#allocation4 + $0x20] sm:$0xff] %vm321_vm12, %v1068_v6 }
0x21f9   :  { %1260 = vrot.lane.b32.xlu1 %v1601_v7, %s1686_s4 }
0x21ff   :  { %v1002_v47 = vpop.permute.xlu0 %1001  ;;  %v1274_v18 = vld [vmem:[#allocation4 + $0x20] sm:$0xff] }
0x2200   :  { %1005 = vst.msk [vmem:[#allocation4 + $0x18] sm:$0xff] %vm321_vm12, %v1002_v47 }
0x2201   :  { %1133 = vrot.lane.b32.xlu1 %v1968_v45, %s1687_s12 }
0x2207   :  { %v1273_v10 = vld [vmem:[#allocation4 + $0x18] sm:$0xff] }
0x2208   :  { %v1279_v11 = vpack.c.bf16 %v1273_v10, %v1272_v9 }
0x2209   :  { %1199 = vrot.lane.b32.xlu1 %v1978_v35, %s1687_s12 }
0x220a   :  { %1457 = vmatmul.msk.bf16.gmra.mxu2 %vm321_vm12, %v1279_v11 }
0x2210   :  { %v1324_v14 = vpop.f32.mrf.mxu2 }
0x2218   :  { %v1326_v13 = vpop.f32.mrf.mxu2 }
0x2219   :  { %v1327_v15 = vadd.f32 %v1481_v12, %v1326_v13 }
0x221b   :  { %1345 = vst [vmem:[#allocation10 + $0x8] sm:$0xff] %v1327_v15 }
0x226b   :  { %v1261_v16 = vpop.permute.xlu1 %1260 }
0x226c   :  { %v1263_v43 = vmul.f32 %v1261_v16, %v1244_v61 }
0x226e   :  { %1265 = vrot.lane.b32.xlu2 %v1263_v43, %s1687_s12 }
0x2273   :  { %v1134_v45 = vpop.permute.xlu1 %1133 }
0x2274   :  { %1137 = vst.msk [vmem:[#allocation4 + $0x28] sm:$0xff] %vm321_vm12, %v1134_v45 }
0x227b   :  { %v1200_v17 = vpop.permute.xlu1 %1199  ;;  %v1275_v25 = vld [vmem:[#allocation4 + $0x28] sm:$0xff] }
0x227c   :  { %1203 = vst.msk [vmem:[#allocation4 + $0x30] sm:$0xff] %vm321_vm12, %v1200_v17  ;;  %v1280_v30 = vpack.c.bf16 %v1275_v25, %v1274_v18 }
0x227e   :  { %1458 = vmatmul.msk.bf16.vlgmr.msra.gmra.mxu3 %vm321_vm12, %v1280_v30 }
0x2283   :  { %v1276_v22 = vld [vmem:[#allocation4 + $0x30] sm:$0xff] }
0x228d   :  { %v1329_v19 = vpop.f32.mrf.mxu2 }
0x228e   :  { %v1330_v41 = vadd.f32 %v1481_v12, %v1329_v19 }
0x2290   :  { %1346 = vst [vmem:[#allocation10 + $0x10] sm:$0xff] %v1330_v41 }
0x2295   :  { %v1331_v20 = vpop.f32.mrf.mxu2 }
0x2296   :  { %v1332_v21 = vadd.f32 %v1481_v12, %v1331_v20 }
0x2298   :  { %1347 = vst [vmem:[#allocation10 + $0x18] sm:$0xff] %v1332_v21 }
0x22c8   :  { %v1266_v42 = vpop.permute.xlu2 %1265 }
0x22c9   :  { %1269 = vst.msk [vmem:[#allocation4 + $0x38] sm:$0xff] %vm321_vm12, %v1266_v42 }
0x22d0   :  { %v1277_v23 = vld [vmem:[#allocation4 + $0x38] sm:$0xff] }
0x22d1   :  { %v1281_v24 = vpack.c.bf16 %v1277_v23, %v1276_v22 }
0x22d3   :  { %1459 = vmatmul.msk.bf16.gmra.mxu3 %vm321_vm12, %v1281_v24 }
0x2301   :  { %v1334_v26 = vpop.f32.mrf.mxu3 }
0x2302   :  { %v1335_v28 = vadd.f32 %v1481_v12, %v1334_v26 }
0x2304   :  { %1348 = vst [vmem:[#allocation10 + $0x20] sm:$0xff] %v1335_v28 }
0x2309   :  { %v1336_v31 = vpop.f32.mrf.mxu3 }
0x230a   :  { %v1337_v32 = vadd.f32 %v1481_v12, %v1336_v31 }
0x230c   :  { %1349 = vst [vmem:[#allocation10 + $0x28] sm:$0xff] %v1337_v32 }
0x2356   :  { %v1339_v33 = vpop.f32.mrf.mxu3 }
0x2357   :  { %v1340_v34 = vadd.f32 %v1481_v12, %v1339_v33 }
0x2359   :  { %1350 = vst [vmem:[#allocation10 + $0x30] sm:$0xff] %v1340_v34 }
0x235e   :  { %v1341_v35 = vpop.f32.mrf.mxu3 }
0x235f   :  { %v1342_v36 = vadd.f32 %v1481_v12, %v1341_v35 }
0x2361   :  { %1351 = vst [vmem:[#allocation10 + $0x38] sm:$0xff] %v1342_v36 }
0x2362   :  { %1365 = dma.vmem_to_hbm [thread:$0]  %s1358_s11, 1024, %s1360_s15, [#allocation7], %s1681_s13, %s1681_s13, %s1682_s14  }
0x2363   :  { %1678 = dma.done.wait [#allocation7], 1024  }
0x2364   :  { %1679 = vsyncadd [#allocation7], 4294966272 }
0x2365   :  { %1370 = vsyncpa [#allocation6], 1 }
0x2366   :  { %1371 = vsyncpa [#allocation9], 1 }
0x2367   :  { %1372 = vsyncpa [#allocation7], 1 }

</bundles_post_ra>
